<compile_context>
chip_gen: v5e
topology: v5e:2x2
jax: 0.10.0
libtpu: 0.0.40
codegen_flags: <defaults>
</compile_context>

<pallas_src>
import jax
import jax.numpy as jnp
from jax import lax
from jax.experimental import pallas as pl
from jax.experimental.pallas import tpu as pltpu


def _vmem_limit(est_bytes):
    # explicit VMEM budget (review: size explicitly, stay within v7x's smaller VMEM)
    return int(min(32 << 20, max(8 << 20, 4 * est_bytes)))


# ---------------------------------------------------------------------------
# Kernel 1: fused BN(scale/shift) + ReLU + 1x1 conv, plus per-block partial
#           sum / sum-of-squares of the conv output (for BN2 statistics).
#   x2d: (R, Cin) flattened (N*H*W, Cin);  scale/shift: (1, Cin);  w: (Cin, Cmid) bf16
# ---------------------------------------------------------------------------
def bn_relu_conv1x1(x2d, scale, shift, w, b, *, tr=1024):
    R, Cin = x2d.shape
    Cmid = w.shape[1]

    tr = min(tr, -(-R // 8) * 8)            # no point tiling past (padded) R
    tr = max(8, -(-tr // 8) * 8)

    def _est(t):
        return 2 * (t * Cin * 4 + t * Cmid * 4) + Cin * Cmid * 2 + 8 * (Cin + Cmid) * 4

    while tr > 128 and _est(tr) > (24 << 20):   # keep double-buffered tiles in budget
        tr //= 2

    G = pl.cdiv(R, tr)
    Rp = G * tr
    if Rp != R:
        x2d = jnp.pad(x2d, ((0, Rp - R), (0, 0)))
    w_bf16 = w.astype(jnp.bfloat16)

    def kernel(x_ref, scale_ref, shift_ref, w_ref, b_ref, o_ref, st_ref):
        # BN affine + ReLU in f32, cast only at the MXU dot (f32 accumulation).
        h = jnp.maximum(x_ref[...] * scale_ref[...] + shift_ref[...], 0.0)
        c = jnp.dot(h.astype(jnp.bfloat16), w_ref[...],
                    preferred_element_type=jnp.float32) + b_ref[...]
        o_ref[...] = c
        # partial BN2 statistics for this row block (mask zero-padded rows).
        if Rp != R:
            row = pl.program_id(0) * tr + lax.broadcasted_iota(jnp.int32, (tr, 1), 0)
            c = jnp.where(row < R, c, 0.0)
        s1 = jnp.sum(c, axis=0, keepdims=True)
        s2 = jnp.sum(c * c, axis=0, keepdims=True)
        st_ref[0] = jnp.concatenate([s1, s2], axis=0)

    out, stats = pl.pallas_call(
        kernel,
        out_shape=(
            jax.ShapeDtypeStruct((Rp, Cmid), jnp.float32),
            jax.ShapeDtypeStruct((G, 2, Cmid), jnp.float32),
        ),
        grid=(G,),
        in_specs=[
            pl.BlockSpec((tr, Cin), lambda i: (i, 0)),
            pl.BlockSpec((1, Cin), lambda i: (0, 0)),
            pl.BlockSpec((1, Cin), lambda i: (0, 0)),
            pl.BlockSpec((Cin, Cmid), lambda i: (0, 0)),
            pl.BlockSpec((1, Cmid), lambda i: (0, 0)),
        ],
        out_specs=(
            pl.BlockSpec((tr, Cmid), lambda i: (i, 0)),
            pl.BlockSpec((1, 2, Cmid), lambda i: (i, 0, 0)),
        ),
        compiler_params=pltpu.CompilerParams(
            dimension_semantics=("parallel",),
            vmem_limit_bytes=_vmem_limit(_est(tr)),
        ),
    )(x2d, scale, shift, w_bf16, b)
    return out[:R], stats


# ---------------------------------------------------------------------------
# Kernel 2: fused BN(scale/shift) + ReLU + 3x3 conv (padding=1), one image/step.
# The 3x3 conv is expressed as 3 matmuls (one per ky) against banded weights of
# shape (W*Cin, W*Cout) that encode the kx taps and the zero padding along W.
# ---------------------------------------------------------------------------
def _build_banded_weight(w_hwio, W):
    """(3,3,Cin,Cout) HWIO -> (3, W*Cin, W*Cout) banded matmul weights."""
    KH, KW, Cin, Cout = w_hwio.shape
    wb = jnp.zeros((KH, W * Cin, W * Cout), w_hwio.dtype)
    for x in range(W):
        for kx in range(KW):
            xin = x + kx - 1
            if 0 <= xin < W:
                wb = wb.at[:, xin * Cin:(xin + 1) * Cin,
                           x * Cout:(x + 1) * Cout].set(w_hwio[:, kx])
    return wb


def bn_relu_conv3x3(c1_3d, scale_t, shift_t, wb_bf16, bias_t):
    # c1_3d: (N, H, W*Cin) f32; scale_t/shift_t: (1, W*Cin) f32
    # wb_bf16: (3, W*Cin, W*Cout) bf16; bias_t: (1, W*Cout) f32
    N, H, WCin = c1_3d.shape
    WCout = wb_bf16.shape[2]

    # TODO(synk): for large H/W, add an H row-tile grid axis (1-row halo) and tile the
    # banded weight along W — the (W*Cin, W*Cout) band grows quadratically in W.
    def kernel(x_ref, s_ref, t_ref, w_ref, b_ref, o_ref):
        # fused BN affine + ReLU in f32; cast to bf16 only for the MXU.
        h = jnp.maximum(x_ref[0] * s_ref[...] + t_ref[...], 0.0)      # (H, W*Cin)
        hb = h.astype(jnp.bfloat16)
        zrow = jnp.zeros((1, WCin), jnp.bfloat16)
        hpad = jnp.concatenate([zrow, hb, zrow], axis=0)              # (H+2, W*Cin)
        acc = jnp.dot(hpad[0:H, :], w_ref[0], preferred_element_type=jnp.float32)
        acc = acc + jnp.dot(hpad[1:H + 1, :], w_ref[1],
                            preferred_element_type=jnp.float32)
        acc = acc + jnp.dot(hpad[2:H + 2, :], w_ref[2],
                            preferred_element_type=jnp.float32)
        o_ref[0] = acc + b_ref[...]                                   # lane-dense slab

    est = 2 * (H * WCin * 4 + H * WCout * 4) + 3 * WCin * WCout * 2 + 4 * WCin * 4
    return pl.pallas_call(
        kernel,
        out_shape=jax.ShapeDtypeStruct((N, H, WCout), jnp.float32),
        grid=(N,),
        in_specs=[
            pl.BlockSpec((1, H, WCin), lambda n: (n, 0, 0)),
            pl.BlockSpec((1, WCin), lambda n: (0, 0)),
            pl.BlockSpec((1, WCin), lambda n: (0, 0)),
            pl.BlockSpec((3, WCin, WCout), lambda n: (0, 0, 0)),
            pl.BlockSpec((1, WCout), lambda n: (0, 0)),
        ],
        out_specs=pl.BlockSpec((1, H, WCout), lambda n: (n, 0, 0)),
        compiler_params=pltpu.CompilerParams(
            dimension_semantics=("parallel",),
            vmem_limit_bytes=_vmem_limit(est),
        ),
    )(c1_3d, scale_t, shift_t, wb_bf16, bias_t)


# ---------------------------------------------------------------------------
# DenseLayer forward (NCHW in / NCHW out, like PyTorch)
# ---------------------------------------------------------------------------
def dense_layer_forward(x_nchw, params, *, eps=1e-5):
    x_nchw = x_nchw.astype(jnp.float32)
    x = jnp.transpose(x_nchw, (0, 2, 3, 1))                  # NHWC
    N, H, W, Cin = x.shape
    Cmid = params["conv1_w"].shape[1]
    Cout = params["conv2_w"].shape[3]
    R = N * H * W

    # BN1 folded to per-channel scale/shift (training-mode batch stats, biased var).
    m1 = x.mean(axis=(0, 1, 2))
    v1 = x.var(axis=(0, 1, 2))
    s1 = params["bn1_g"] / jnp.sqrt(v1 + eps)
    t1 = params["bn1_b"] - m1 * s1

    c1_flat, stats = bn_relu_conv1x1(
        x.reshape(R, Cin), s1[None, :], t1[None, :],
        params["conv1_w"], params["conv1_b"][None, :])

    # BN2 statistics from the kernel's fused partial sums (no extra pass over c1).
    st = stats.sum(axis=0)
    mean2 = st[0] / R
    var2 = jnp.maximum(st[1] / R - mean2 * mean2, 0.0)
    s2 = params["bn2_g"] / jnp.sqrt(var2 + eps)
    t2 = params["bn2_b"] - mean2 * s2

    # Fused BN2 + ReLU + 3x3 conv on the lane-flattened (N, H, W*Cmid) layout.
    c1_3d = c1_flat.reshape(N, H, W * Cmid)                  # contiguous, free reshape
    wb = _build_banded_weight(params["conv2_w"], W).astype(jnp.bfloat16)
    new_flat = bn_relu_conv3x3(
        c1_3d,
        jnp.tile(s2, W)[None, :], jnp.tile(t2, W)[None, :],
        wb, jnp.tile(params["conv2_b"], W)[None, :])         # (N, H, W*Cout)
    new_nchw = jnp.transpose(new_flat.reshape(N, H, W, Cout), (0, 3, 1, 2))

    # TODO(synk): final channel concat (+ NCHW<->NHWC transposes) stays in XLA.
    return jnp.concatenate([x_nchw, new_nchw], axis=1)


# ---------------------------------------------------------------------------
# Pure-JAX reference with matching bf16-at-the-dot numerics (f32 accumulation)
# ---------------------------------------------------------------------------
def dense_layer_ref(x_nchw, params, *, eps=1e-5):
    x_nchw = x_nchw.astype(jnp.float32)
    x = jnp.transpose(x_nchw, (0, 2, 3, 1))

    def bn(h, g, b):
        m = h.mean((0, 1, 2))
        v = h.var((0, 1, 2))
        return (h - m) / jnp.sqrt(v + eps) * g + b

    h1 = jax.nn.relu(bn(x, params["bn1_g"], params["bn1_b"]))
    c1 = jnp.einsum("nhwc,cd->nhwd", h1.astype(jnp.bfloat16),
                    params["conv1_w"].astype(jnp.bfloat16),
                    preferred_element_type=jnp.float32) + params["conv1_b"]
    a2 = jax.nn.relu(bn(c1, params["bn2_g"], params["bn2_b"]))
    y = lax.conv_general_dilated(
        a2.astype(jnp.bfloat16), params["conv2_w"].astype(jnp.bfloat16),
        (1, 1), "SAME", dimension_numbers=("NHWC", "HWIO", "NHWC"),
        preferred_element_type=jnp.float32) + params["conv2_b"]
    return jnp.concatenate([x_nchw, jnp.transpose(y, (0, 3, 1, 2))], axis=1)


def init_params(key, input_feature, growth_rate):
    cmid = growth_rate * 4
    k1, k2, k3, k4 = jax.random.split(key, 4)
    return {
        "bn1_g": jnp.ones((input_feature,), jnp.float32),
        "bn1_b": jnp.zeros((input_feature,), jnp.float32),
        # conv1: 1x1, (Cin -> Cmid), stored as (Cin, Cmid)
        "conv1_w": 0.1 * jax.random.normal(k1, (input_feature, cmid), jnp.float32),
        "conv1_b": 0.05 * jax.random.normal(k2, (cmid,), jnp.float32),
        "bn2_g": jnp.ones((cmid,), jnp.float32),
        "bn2_b": jnp.zeros((cmid,), jnp.float32),
        # conv2: 3x3, (Cmid -> growth_rate), stored HWIO: (3, 3, Cmid, Cout)
        "conv2_w": 0.1 * jax.random.normal(k3, (3, 3, cmid, growth_rate), jnp.float32),
        "conv2_b": 0.05 * jax.random.normal(k4, (growth_rate,), jnp.float32),
    }


if __name__ == "__main__":
    key = jax.random.PRNGKey(0)
    kx_, kp_ = jax.random.split(key)

    N, C, H, W = 2, 4, 16, 16              # input_feature = 4
    growth_rate = 8
    x = jax.random.normal(kx_, (N, C, H, W), jnp.float32)
    params = init_params(kp_, C, growth_rate)

    fwd = jax.jit(dense_layer_forward)
    out = jax.block_until_ready(fwd(x, params))
    assert out.shape == (N, C + growth_rate, H, W), out.shape

    ref = jax.block_until_ready(dense_layer_ref(x, params))
    max_err = float(jnp.max(jnp.abs(out - ref)))
    assert jnp.allclose(out, ref, atol=5e-3, rtol=5e-3), max_err

    print("KERNEL_OK")
</pallas_src>

<mosaic_0001>
module attributes {stable_mosaic.version = 11 : i64} {
  func.func @kernel(%arg0: i32, %arg1: memref<512x4xf32, #tpu.memory_space<vmem>>, %arg2: memref<1x4xf32, #tpu.memory_space<vmem>>, %arg3: memref<1x4xf32, #tpu.memory_space<vmem>>, %arg4: memref<4x32xbf16, #tpu.memory_space<vmem>>, %arg5: memref<1x32xf32, #tpu.memory_space<vmem>>, %arg6: memref<512x32xf32, #tpu.memory_space<vmem>>, %arg7: memref<1x2x32xf32, #tpu.memory_space<vmem>>) attributes {dimension_semantics = [#tpu.dimension_semantics<parallel>], iteration_bounds = array<i64: 1>, scalar_prefetch = 0 : i64, scratch_operands = 0 : i64, tpu.core_type = #tpu.core_type<tc>, window_params = [{transform_indices = @transform_0, window_bounds = array<i64: 512, 4>}, {pipeline_mode = #tpu.pipeline_mode<synchronous>, transform_indices = @transform_1, window_bounds = array<i64: 1, 4>}, {pipeline_mode = #tpu.pipeline_mode<synchronous>, transform_indices = @transform_2, window_bounds = array<i64: 1, 4>}, {pipeline_mode = #tpu.pipeline_mode<synchronous>, transform_indices = @transform_3, window_bounds = array<i64: 4, 32>}, {pipeline_mode = #tpu.pipeline_mode<synchronous>, transform_indices = @transform_4, window_bounds = array<i64: 1, 32>}, {transform_indices = @transform_5, window_bounds = array<i64: 512, 32>}, {transform_indices = @transform_6, window_bounds = array<i64: 1, 2, 32>}]} {
    %c0 = arith.constant 0 : index
    %c0_0 = arith.constant 0 : index
    %0 = vector.load %arg1[%c0, %c0_0] : memref<512x4xf32, #tpu.memory_space<vmem>>, vector<512x4xf32>
    %c0_1 = arith.constant 0 : index
    %c0_2 = arith.constant 0 : index
    %1 = vector.load %arg2[%c0_1, %c0_2] : memref<1x4xf32, #tpu.memory_space<vmem>>, vector<1x4xf32>
    %2 = vector.broadcast %1 : vector<1x4xf32> to vector<512x4xf32>
    %3 = arith.mulf %0, %2 : vector<512x4xf32>
    %c0_3 = arith.constant 0 : index
    %c0_4 = arith.constant 0 : index
    %4 = vector.load %arg3[%c0_3, %c0_4] : memref<1x4xf32, #tpu.memory_space<vmem>>, vector<1x4xf32>
    %5 = vector.broadcast %4 : vector<1x4xf32> to vector<512x4xf32>
    %6 = arith.addf %3, %5 : vector<512x4xf32>
    %cst = arith.constant 0.000000e+00 : f32
    %7 = vector.broadcast %cst : f32 to vector<512x4xf32>
    %8 = arith.maximumf %6, %7 : vector<512x4xf32>
    %9 = arith.truncf %8 : vector<512x4xf32> to vector<512x4xbf16>
    %c0_5 = arith.constant 0 : index
    %c0_6 = arith.constant 0 : index
    %10 = vector.load %arg4[%c0_5, %c0_6] : memref<4x32xbf16, #tpu.memory_space<vmem>>, vector<4x32xbf16>
    %cst_7 = arith.constant dense<0.000000e+00> : vector<512x32xf32>
    %11 = tpu.matmul %9, %10, %cst_7 {dimension_numbers = #tpu.dot_dimension_numbers<[1], [0], [0], [1], [0, 0, 1, 1], [], []>} : vector<512x4xbf16>, vector<4x32xbf16>, vector<512x32xf32> -> vector<512x32xf32>
    %c0_8 = arith.constant 0 : index
    %c0_9 = arith.constant 0 : index
    %12 = vector.load %arg5[%c0_8, %c0_9] : memref<1x32xf32, #tpu.memory_space<vmem>>, vector<1x32xf32>
    %13 = vector.broadcast %12 : vector<1x32xf32> to vector<512x32xf32>
    %14 = arith.addf %11, %13 : vector<512x32xf32>
    %c0_10 = arith.constant 0 : index
    %c0_11 = arith.constant 0 : index
    %15 = vector.load %arg6[%c0_10, %c0_11] : memref<512x32xf32, #tpu.memory_space<vmem>>, vector<512x32xf32>
    tpu.vector_store %arg6[%c0_10, %c0_11], %14 {strides = array<i32>} : memref<512x32xf32, #tpu.memory_space<vmem>>, vector<512x32xf32>,
    %cst_12 = arith.constant dense<0.000000e+00> : vector<32xf32>
    %16 = vector.multi_reduction <add>, %14, %cst_12 [0] : vector<512x32xf32> to vector<32xf32>
    %17 = vector.shape_cast %16 : vector<32xf32> to vector<1x32xf32>
    %18 = arith.mulf %14, %14 : vector<512x32xf32>
    %cst_13 = arith.constant dense<0.000000e+00> : vector<32xf32>
    %19 = vector.multi_reduction <add>, %18, %cst_13 [0] : vector<512x32xf32> to vector<32xf32>
    %20 = vector.shape_cast %19 : vector<32xf32> to vector<1x32xf32>
    %21 = tpu.concatenate %17, %20 in 0 : vector<1x32xf32>, vector<1x32xf32> -> vector<2x32xf32>
    %c0_14 = arith.constant 0 : index
    %c0_15 = arith.constant 0 : index
    %c0_16 = arith.constant 0 : index
    %22 = vector.load %arg7[%c0_14, %c0_15, %c0_16] : memref<1x2x32xf32, #tpu.memory_space<vmem>>, vector<1x2x32xf32>
    %23 = vector.shape_cast %22 : vector<1x2x32xf32> to vector<2x32xf32>
    %24 = vector.shape_cast %21 : vector<2x32xf32> to vector<1x2x32xf32>
    tpu.vector_store %arg7[%c0_14, %c0_15, %c0_16], %24 {strides = array<i32>} : memref<1x2x32xf32, #tpu.memory_space<vmem>>, vector<1x2x32xf32>,
    return
  }
  func.func @transform_0(%arg0: i32) -> (i32, i32) {
    %c0_i32 = arith.constant 0 : i32
    %c0_i32_0 = arith.constant 0 : i32
    return %arg0, %c0_i32 : i32, i32
  }
  func.func @transform_1(%arg0: i32) -> (i32, i32) {
    %c0_i32 = arith.constant 0 : i32
    %c0_i32_0 = arith.constant 0 : i32
    %c0_i32_1 = arith.constant 0 : i32
    return %c0_i32, %c0_i32_0 : i32, i32
  }
  func.func @transform_2(%arg0: i32) -> (i32, i32) {
    %c0_i32 = arith.constant 0 : i32
    %c0_i32_0 = arith.constant 0 : i32
    %c0_i32_1 = arith.constant 0 : i32
    return %c0_i32, %c0_i32_0 : i32, i32
  }
  func.func @transform_3(%arg0: i32) -> (i32, i32) {
    %c0_i32 = arith.constant 0 : i32
    %c0_i32_0 = arith.constant 0 : i32
    %c0_i32_1 = arith.constant 0 : i32
    return %c0_i32, %c0_i32_0 : i32, i32
  }
  func.func @transform_4(%arg0: i32) -> (i32, i32) {
    %c0_i32 = arith.constant 0 : i32
    %c0_i32_0 = arith.constant 0 : i32
    %c0_i32_1 = arith.constant 0 : i32
    return %c0_i32, %c0_i32_0 : i32, i32
  }
  func.func @transform_5(%arg0: i32) -> (i32, i32) {
    %c0_i32 = arith.constant 0 : i32
    %c0_i32_0 = arith.constant 0 : i32
    return %arg0, %c0_i32 : i32, i32
  }
  func.func @transform_6(%arg0: i32) -> (i32, i32, i32) {
    %c0_i32 = arith.constant 0 : i32
    %c0_i32_0 = arith.constant 0 : i32
    %c0_i32_1 = arith.constant 0 : i32
    return %arg0, %c0_i32, %c0_i32_0 : i32, i32, i32
  }
}

module attributes {stable_mosaic.version = 11 : i64} {
  func.func @kernel(%arg0: i32, %arg1: memref<1x16x512xf32, #tpu.memory_space<vmem>>, %arg2: memref<1x512xf32, #tpu.memory_space<vmem>>, %arg3: memref<1x512xf32, #tpu.memory_space<vmem>>, %arg4: memref<3x512x128xbf16, #tpu.memory_space<vmem>>, %arg5: memref<1x128xf32, #tpu.memory_space<vmem>>, %arg6: memref<1x16x128xf32, #tpu.memory_space<vmem>>) attributes {dimension_semantics = [#tpu.dimension_semantics<parallel>], iteration_bounds = array<i64: 2>, scalar_prefetch = 0 : i64, scratch_operands = 0 : i64, tpu.core_type = #tpu.core_type<tc>, window_params = [{transform_indices = @transform_0, window_bounds = array<i64: 1, 16, 512>}, {pipeline_mode = #tpu.pipeline_mode<synchronous>, transform_indices = @transform_1, window_bounds = array<i64: 1, 512>}, {pipeline_mode = #tpu.pipeline_mode<synchronous>, transform_indices = @transform_2, window_bounds = array<i64: 1, 512>}, {pipeline_mode = #tpu.pipeline_mode<synchronous>, transform_indices = @transform_3, window_bounds = array<i64: 3, 512, 128>}, {pipeline_mode = #tpu.pipeline_mode<synchronous>, transform_indices = @transform_4, window_bounds = array<i64: 1, 128>}, {transform_indices = @transform_5, window_bounds = array<i64: 1, 16, 128>}]} {
    %c0 = arith.constant 0 : index
    %c0_0 = arith.constant 0 : index
    %c0_1 = arith.constant 0 : index
    %0 = vector.load %arg1[%c0, %c0_0, %c0_1] : memref<1x16x512xf32, #tpu.memory_space<vmem>>, vector<1x16x512xf32>
    %1 = vector.shape_cast %0 : vector<1x16x512xf32> to vector<16x512xf32>
    %c0_2 = arith.constant 0 : index
    %c0_3 = arith.constant 0 : index
    %2 = vector.load %arg2[%c0_2, %c0_3] : memref<1x512xf32, #tpu.memory_space<vmem>>, vector<1x512xf32>
    %3 = vector.broadcast %2 : vector<1x512xf32> to vector<16x512xf32>
    %4 = arith.mulf %1, %3 : vector<16x512xf32>
    %c0_4 = arith.constant 0 : index
    %c0_5 = arith.constant 0 : index
    %5 = vector.load %arg3[%c0_4, %c0_5] : memref<1x512xf32, #tpu.memory_space<vmem>>, vector<1x512xf32>
    %6 = vector.broadcast %5 : vector<1x512xf32> to vector<16x512xf32>
    %7 = arith.addf %4, %6 : vector<16x512xf32>
    %cst = arith.constant 0.000000e+00 : f32
    %8 = vector.broadcast %cst : f32 to vector<16x512xf32>
    %9 = arith.maximumf %7, %8 : vector<16x512xf32>
    %10 = arith.truncf %9 : vector<16x512xf32> to vector<16x512xbf16>
    %cst_6 = arith.constant 0.000000e+00 : bf16
    %11 = vector.broadcast %cst_6 : bf16 to vector<1x512xbf16>
    %12 = tpu.concatenate %11, %10, %11 in 0 : vector<1x512xbf16>, vector<16x512xbf16>, vector<1x512xbf16> -> vector<18x512xbf16>
    %13 = vector.extract_strided_slice %12 {offsets = [0, 0], sizes = [16, 512], strides = [1, 1]} : vector<18x512xbf16> to vector<16x512xbf16>
    %c0_7 = arith.constant 0 : index
    %c0_8 = arith.constant 0 : index
    %c0_9 = arith.constant 0 : index
    %14 = vector.load %arg4[%c0_7, %c0_8, %c0_9] : memref<3x512x128xbf16, #tpu.memory_space<vmem>>, vector<1x512x128xbf16>
    %15 = vector.shape_cast %14 : vector<1x512x128xbf16> to vector<512x128xbf16>
    %cst_10 = arith.constant dense<0.000000e+00> : vector<16x128xf32>
    %16 = tpu.matmul %13, %15, %cst_10 {dimension_numbers = #tpu.dot_dimension_numbers<[1], [0], [0], [1], [0, 0, 1, 1], [], []>} : vector<16x512xbf16>, vector<512x128xbf16>, vector<16x128xf32> -> vector<16x128xf32>
    %17 = vector.extract_strided_slice %12 {offsets = [1, 0], sizes = [16, 512], strides = [1, 1]} : vector<18x512xbf16> to vector<16x512xbf16>
    %c1 = arith.constant 1 : index
    %c0_11 = arith.constant 0 : index
    %c0_12 = arith.constant 0 : index
    %18 = vector.load %arg4[%c1, %c0_11, %c0_12] : memref<3x512x128xbf16, #tpu.memory_space<vmem>>, vector<1x512x128xbf16>
    %19 = vector.shape_cast %18 : vector<1x512x128xbf16> to vector<512x128xbf16>
    %cst_13 = arith.constant dense<0.000000e+00> : vector<16x128xf32>
    %20 = tpu.matmul %17, %19, %cst_13 {dimension_numbers = #tpu.dot_dimension_numbers<[1], [0], [0], [1], [0, 0, 1, 1], [], []>} : vector<16x512xbf16>, vector<512x128xbf16>, vector<16x128xf32> -> vector<16x128xf32>
    %21 = arith.addf %16, %20 : vector<16x128xf32>
    %22 = vector.extract_strided_slice %12 {offsets = [2, 0], sizes = [16, 512], strides = [1, 1]} : vector<18x512xbf16> to vector<16x512xbf16>
    %c2 = arith.constant 2 : index
    %c0_14 = arith.constant 0 : index
    %c0_15 = arith.constant 0 : index
    %23 = vector.load %arg4[%c2, %c0_14, %c0_15] : memref<3x512x128xbf16, #tpu.memory_space<vmem>>, vector<1x512x128xbf16>
    %24 = vector.shape_cast %23 : vector<1x512x128xbf16> to vector<512x128xbf16>
    %cst_16 = arith.constant dense<0.000000e+00> : vector<16x128xf32>
    %25 = tpu.matmul %22, %24, %cst_16 {dimension_numbers = #tpu.dot_dimension_numbers<[1], [0], [0], [1], [0, 0, 1, 1], [], []>} : vector<16x512xbf16>, vector<512x128xbf16>, vector<16x128xf32> -> vector<16x128xf32>
    %26 = arith.addf %21, %25 : vector<16x128xf32>
    %c0_17 = arith.constant 0 : index
    %c0_18 = arith.constant 0 : index
    %27 = vector.load %arg5[%c0_17, %c0_18] : memref<1x128xf32, #tpu.memory_space<vmem>>, vector<1x128xf32>
    %28 = vector.broadcast %27 : vector<1x128xf32> to vector<16x128xf32>
    %29 = arith.addf %26, %28 : vector<16x128xf32>
    %c0_19 = arith.constant 0 : index
    %c0_20 = arith.constant 0 : index
    %c0_21 = arith.constant 0 : index
    %30 = vector.load %arg6[%c0_19, %c0_20, %c0_21] : memref<1x16x128xf32, #tpu.memory_space<vmem>>, vector<1x16x128xf32>
    %31 = vector.shape_cast %30 : vector<1x16x128xf32> to vector<16x128xf32>
    %32 = vector.shape_cast %29 : vector<16x128xf32> to vector<1x16x128xf32>
    tpu.vector_store %arg6[%c0_19, %c0_20, %c0_21], %32 {strides = array<i32>} : memref<1x16x128xf32, #tpu.memory_space<vmem>>, vector<1x16x128xf32>,
    return
  }
  func.func @transform_0(%arg0: i32) -> (i32, i32, i32) {
    %c0_i32 = arith.constant 0 : i32
    %c0_i32_0 = arith.constant 0 : i32
    %c0_i32_1 = arith.constant 0 : i32
    return %arg0, %c0_i32, %c0_i32_0 : i32, i32, i32
  }
  func.func @transform_1(%arg0: i32) -> (i32, i32) {
    %c0_i32 = arith.constant 0 : i32
    %c0_i32_0 = arith.constant 0 : i32
    %c0_i32_1 = arith.constant 0 : i32
    return %c0_i32, %c0_i32_0 : i32, i32
  }
  func.func @transform_2(%arg0: i32) -> (i32, i32) {
    %c0_i32 = arith.constant 0 : i32
    %c0_i32_0 = arith.constant 0 : i32
    %c0_i32_1 = arith.constant 0 : i32
    return %c0_i32, %c0_i32_0 : i32, i32
  }
  func.func @transform_3(%arg0: i32) -> (i32, i32, i32) {
    %c0_i32 = arith.constant 0 : i32
    %c0_i32_0 = arith.constant 0 : i32
    %c0_i32_1 = arith.constant 0 : i32
    %c0_i32_2 = arith.constant 0 : i32
    return %c0_i32, %c0_i32_0, %c0_i32_1 : i32, i32, i32
  }
  func.func @transform_4(%arg0: i32) -> (i32, i32) {
    %c0_i32 = arith.constant 0 : i32
    %c0_i32_0 = arith.constant 0 : i32
    %c0_i32_1 = arith.constant 0 : i32
    return %c0_i32, %c0_i32_0 : i32, i32
  }
  func.func @transform_5(%arg0: i32) -> (i32, i32, i32) {
    %c0_i32 = arith.constant 0 : i32
    %c0_i32_0 = arith.constant 0 : i32
    %c0_i32_1 = arith.constant 0 : i32
    return %arg0, %c0_i32, %c0_i32_0 : i32, i32, i32
  }
}

</mosaic_0001>

<bundles_post_ra>
// kernel: tile.18
= control target key start
LH: loop header
LB: loop body
LE: loop exit
PB: predicated region body
PF: predicated region fallthrough
CT: control target
= control target key end

     0   :  { %s28_s0 = inlined_call_operand.vmem [shape: f32[32], index: 0, kind: input, shape index: {}]   ;;  %s29_s1 = inlined_call_operand.vmem [shape: f32[16,32], index: 1, kind: output, shape index: {}]  }
   0x1   :  { %v4_v0 = vld [vmem:[%s28_s0] ss:$0 sm:$0xff] }
   0x2   :  { %5 = vst [vmem:[%s29_s1] sm:$0xff] %v4_v0 }
   0x3   :  { %8 = vst [vmem:[%s29_s1 + $0x8] sm:$0xff] %v4_v0 }

// kernel: tile.19
= control target key start
LH: loop header
LB: loop body
LE: loop exit
PB: predicated region body
PF: predicated region fallthrough
CT: control target
= control target key end

     0   :  { %s56_s8 = smov 96   ;;  %s57_s11 = smov 32   ;;  %vm3_vm0 = vcmask 261120   ;;  %vm9_vm1 = vcmask 1048320   ;;  %vm15_vm2 = vcmask 785920   ;;  %vm21_vm3 = vcmask 523520   ;;  %s93_s0 = inlined_call_operand.vmem [shape: f32[16,32], index: 0, kind: input, shape index: {}]   ;;  %s94_s1 = inlined_call_operand.vmem [shape: f32[1,512], index: 1, kind: output, shape index: {}]  }
   0x1   :  { %v47_v0 = vld [vmem:[%s93_s0 + $0x3] ss:$4 sm:$0xf]   ;;  %v49_v1 = vld [vmem:[%s93_s0 + $0x1] ss:$4 sm:$0xf]  }
   0x2   :  { %7 = vrot.lane.b32.xlu0 %v47_v0, %s56_s8  ;;  %19 = vrot.lane.b32.xlu1 %v49_v1, %s57_s11  ;;  %v48_v2 = vld [vmem:[%s93_s0 + $0x2] ss:$4 sm:$0xf]   ;;  %s58_s14 = smov 64  }
   0x3   :  { %v2_v3 = vld [vmem:[%s93_s0] ss:$4 sm:$0xf]  }
   0x4   :  { %4 = vst.msk [vmem:[#allocation0] ss:$8 sm:$0xf] %vm3_vm0, %v2_v3  }
   0xa   :  { %13 = vrot.lane.b32.xlu0 %v48_v2, %s58_s14 }
  0x74   :  { %v8_v4 = vpop.permute.xlu0 %7   ;;  %v20_v5 = vpop.permute.xlu1 %19  }
  0x75   :  { %10 = vst.msk [vmem:[#allocation0] ss:$8 sm:$0xf] %vm9_vm1, %v8_v4  }
  0x7c   :  { %v14_v6 = vpop.permute.xlu0 %13  }
  0x7d   :  { %16 = vst.msk [vmem:[#allocation0] ss:$8 sm:$0xf] %vm15_vm2, %v14_v6  }
  0x7e   :  { %22 = vst.msk [vmem:[#allocation0] ss:$8 sm:$0xf] %vm21_vm3, %v20_v5  }
  0x85   :  { %v25_v7 = vld [vmem:[#allocation0] sm:$0x1]  ;;  %v30_v8 = vld [vmem:[#allocation0 + $0x8] sm:$0x1]  ;;  %v36_v9 = vld [vmem:[#allocation0 + $0x10] sm:$0x1] }
  0x86   :  { %28 = vst [vmem:[%s94_s1] sm:$0x1] %v25_v7  ;;  %v42_v10 = vld [vmem:[#allocation0 + $0x18] sm:$0x1] }
  0x87   :  { %50 = vst [vmem:[%s94_s1 + $0x1] sm:$0x1] %v30_v8 }
  0x88   :  { %51 = vst [vmem:[%s94_s1 + $0x2] sm:$0x1] %v36_v9 }
  0x89   :  { %52 = vst [vmem:[%s94_s1 + $0x3] sm:$0x1] %v42_v10 }

// kernel: tile.28
= control target key start
LH: loop header
LB: loop body
LE: loop exit
PB: predicated region body
PF: predicated region fallthrough
CT: control target
= control target key end

     0   :  { %s28_s0 = inlined_call_operand.vmem [shape: f32[8], index: 0, kind: input, shape index: {}]   ;;  %s29_s1 = inlined_call_operand.vmem [shape: f32[16,8], index: 1, kind: output, shape index: {}]  }
   0x1   :  { %v4_v0 = vld [vmem:[%s28_s0] ss:$0 sm:$0xff] }
   0x2   :  { %5 = vst [vmem:[%s29_s1] sm:$0xff] %v4_v0 }
   0x3   :  { %8 = vst [vmem:[%s29_s1 + $0x8] sm:$0xff] %v4_v0 }

// kernel: tile.29
= control target key start
LH: loop header
LB: loop body
LE: loop exit
PB: predicated region body
PF: predicated region fallthrough
CT: control target
= control target key end

     0   :  { %s131_s10 = smov 120   ;;  %s132_s11 = smov 104   ;;  %vm3_vm0 = vcmask 64512   ;;  %vm9_vm1 = vcmask 1048512   ;;  %vm15_vm2 = vcmask 982912   ;;  %vm21_vm3 = vcmask 917312   ;;  %s207_s0 = inlined_call_operand.vmem [shape: f32[16,8], index: 0, kind: input, shape index: {}]   ;;  %s208_s1 = inlined_call_operand.vmem [shape: f32[1,128], index: 1, kind: output, shape index: {}]  }
   0x1   :  { %v101_v0 = vld [vmem:[%s207_s0 + $0xf] sm:$0x1]   ;;  %v103_v1 = vld [vmem:[%s207_s0 + $0xd] sm:$0x1]   ;;  %v105_v2 = vld [vmem:[%s207_s0 + $0xb] sm:$0x1]  }
   0x2   :  { %7 = vrot.lane.b32.xlu0 %v101_v0, %s131_s10  ;;  %19 = vrot.lane.b32.xlu1 %v103_v1, %s132_s11  ;;  %s133_s14 = smov 88   ;;  %v102_v3 = vld [vmem:[%s207_s0 + $0xe] sm:$0x1]   ;;  %v104_v4 = vld [vmem:[%s207_s0 + $0xc] sm:$0x1]   ;;  %s134_s19 = smov 112  }
   0x3   :  { %31 = vrot.lane.b32.xlu2 %v105_v2, %s133_s14  ;;  %s135_s20 = smov 96   ;;  %v106_v5 = vld [vmem:[%s207_s0 + $0xa] sm:$0x1]   ;;  %s136_s23 = smov 80   ;;  %v107_v6 = vld [vmem:[%s207_s0 + $0x9] sm:$0x1]  }
   0x4   :  { %v108_v7 = vld [vmem:[%s207_s0 + $0x8] sm:$0x1]   ;;  %s137_s28 = smov 72   ;;  %s138_s29 = smov 64   ;;  %v109_v8 = vld [vmem:[%s207_s0 + $0x7] sm:$0x1]  }
   0x5   :  { %s139_s3 = smov 56   ;;  %v110_v9 = vld [vmem:[%s207_s0 + $0x6] sm:$0x1]   ;;  %v111_v10 = vld [vmem:[%s207_s0 + $0x5] sm:$0x1]   ;;  %s140_s8 = smov 48  }
   0x6   :  { %s141_s9 = smov 40   ;;  %v112_v11 = vld [vmem:[%s207_s0 + $0x4] sm:$0x1]   ;;  %s142_s12 = smov 32   ;;  %v113_v12 = vld [vmem:[%s207_s0 + $0x3] sm:$0x1]  }
   0x7   :  { %v114_v13 = vld [vmem:[%s207_s0 + $0x2] sm:$0x1]   ;;  %s143_s17 = smov 24   ;;  %s144_s18 = smov 16   ;;  %v115_v14 = vld [vmem:[%s207_s0 + $0x1] sm:$0x1]  }
   0x8   :  { %s145_s21 = smov 8   ;;  %v2_v15 = vld [vmem:[%s207_s0] sm:$0x1]   ;;  %vm27_vm4 = vcmask 851712   ;;  %vm33_vm5 = vcmask 786112   ;;  %vm39_vm6 = vcmask 720512  }
   0x9   :  { %4 = vst.msk [vmem:[#allocation0] sm:$0x1] %vm3_vm0, %v2_v15   ;;  %vm45_vm7 = vcmask 654912   ;;  %vm51_vm8 = vcmask 589312   ;;  %vm57_vm9 = vcmask 523712   ;;  %vm63_vm10 = vcmask 458112  }
   0xa   :  { %13 = vrot.lane.b32.xlu0 %v102_v3, %s134_s19  ;;  %25 = vrot.lane.b32.xlu1 %v104_v4, %s135_s20  ;;  %vm69_vm11 = vcmask 392512   ;;  %vm75_vm12 = vcmask 326912   ;;  %vm81_vm13 = vcmask 261312   ;;  %vm87_vm14 = vcmask 195712  }
   0xb   :  { %37 = vrot.lane.b32.xlu2 %v106_v5, %s136_s23  ;;  %vm93_vm15 = vcmask 130112  }
  0x12   :  { %43 = vrot.lane.b32.xlu0 %v107_v6, %s137_s28  ;;  %49 = vrot.lane.b32.xlu1 %v108_v7, %s138_s29 }
  0x13   :  { %55 = vrot.lane.b32.xlu2 %v109_v8, %s139_s3 }
  0x1a   :  { %61 = vrot.lane.b32.xlu0 %v110_v9, %s140_s8  ;;  %67 = vrot.lane.b32.xlu1 %v111_v10, %s141_s9 }
  0x1b   :  { %73 = vrot.lane.b32.xlu2 %v112_v11, %s142_s12 }
  0x22   :  { %79 = vrot.lane.b32.xlu0 %v113_v12, %s143_s17  ;;  %85 = vrot.lane.b32.xlu1 %v114_v13, %s144_s18 }
  0x23   :  { %91 = vrot.lane.b32.xlu2 %v115_v14, %s145_s21 }
  0x5d   :  { %v32_v16 = vpop.permute.xlu2 %31  }
  0x65   :  { %v38_v17 = vpop.permute.xlu2 %37  }
  0x6d   :  { %v56_v18 = vpop.permute.xlu2 %55  }
  0x74   :  { %v8_v19 = vpop.permute.xlu0 %7   ;;  %v20_v20 = vpop.permute.xlu1 %19  }
  0x75   :  { %10 = vst.msk [vmem:[#allocation0] sm:$0x1] %vm9_vm1, %v8_v19   ;;  %v74_v21 = vpop.permute.xlu2 %73  }
  0x7c   :  { %v14_v22 = vpop.permute.xlu0 %13   ;;  %v26_v23 = vpop.permute.xlu1 %25  }
  0x7d   :  { %16 = vst.msk [vmem:[#allocation0] sm:$0x1] %vm15_vm2, %v14_v22   ;;  %v92_v24 = vpop.permute.xlu2 %91  }
  0x7e   :  { %22 = vst.msk [vmem:[#allocation0] sm:$0x1] %vm21_vm3, %v20_v20  }
  0x7f   :  { %28 = vst.msk [vmem:[#allocation0] sm:$0x1] %vm27_vm4, %v26_v23  }
  0x80   :  { %34 = vst.msk [vmem:[#allocation0] sm:$0x1] %vm33_vm5, %v32_v16  }
  0x81   :  { %40 = vst.msk [vmem:[#allocation0] sm:$0x1] %vm39_vm6, %v38_v17  }
  0x84   :  { %v44_v25 = vpop.permute.xlu0 %43   ;;  %v50_v26 = vpop.permute.xlu1 %49  }
  0x85   :  { %46 = vst.msk [vmem:[#allocation0] sm:$0x1] %vm45_vm7, %v44_v25  }
  0x86   :  { %52 = vst.msk [vmem:[#allocation0] sm:$0x1] %vm51_vm8, %v50_v26  }
  0x87   :  { %58 = vst.msk [vmem:[#allocation0] sm:$0x1] %vm57_vm9, %v56_v18  }
  0x8c   :  { %v62_v27 = vpop.permute.xlu0 %61   ;;  %v68_v28 = vpop.permute.xlu1 %67  }
  0x8d   :  { %64 = vst.msk [vmem:[#allocation0] sm:$0x1] %vm63_vm10, %v62_v27  }
  0x8e   :  { %70 = vst.msk [vmem:[#allocation0] sm:$0x1] %vm69_vm11, %v68_v28  }
  0x8f   :  { %76 = vst.msk [vmem:[#allocation0] sm:$0x1] %vm75_vm12, %v74_v21  }
  0x94   :  { %v80_v29 = vpop.permute.xlu0 %79   ;;  %v86_v30 = vpop.permute.xlu1 %85  }
  0x95   :  { %82 = vst.msk [vmem:[#allocation0] sm:$0x1] %vm81_vm13, %v80_v29  }
  0x96   :  { %88 = vst.msk [vmem:[#allocation0] sm:$0x1] %vm87_vm14, %v86_v30  }
  0x97   :  { %94 = vst.msk [vmem:[#allocation0] sm:$0x1] %vm93_vm15, %v92_v24  }
  0x9e   :  { %v97_v31 = vld [vmem:[#allocation0] sm:$0x1] }
  0x9f   :  { %100 = vst [vmem:[%s208_s1] sm:$0x1] %v97_v31 }

// kernel: dense_layer_forward.2
= control target key start
LH: loop header
LB: loop body
LE: loop exit
PB: predicated region body
PF: predicated region fallthrough
CT: control target
= control target key end

     0   :  { %vm421_vm0 = vcmask 1041408   ;;  %vm324_vm1 = vcmask 31744   ;;  %vm594_vm2 = vcmask 261120   ;;  %vm989_vm3 = vcmask 1040384   ;;  %s2231_s3 = inlined_call_operand.vmem [shape: bf16[4,32], index: 3, kind: input, shape index: {}]   ;;  %s2232_s0 = inlined_call_operand.vmem [shape: f32[512,4], index: 0, kind: input, shape index: {}]   ;;  %s2233_s1 = inlined_call_operand.vmem [shape: f32[1,4], index: 1, kind: input, shape index: {}]   ;;  %s2234_s2 = inlined_call_operand.vmem [shape: f32[1,4], index: 2, kind: input, shape index: {}]   ;;  %s2235_s4 = inlined_call_operand.vmem [shape: f32[1,32], index: 4, kind: input, shape index: {}]   ;;  %s2236_s5 = inlined_call_operand.vmem [shape: f32[512,32], index: 5, kind: output, shape index: {0}]   ;;  %s2237_s6 = inlined_call_operand.vmem [shape: f32[1,2,32], index: 6, kind: output, shape index: {1}]  }
   0x1   :  { %v319_v0 = vld [vmem:[%s2231_s3] sm:$0x3]  ;;  %v24_v2 = vld [vmem:[%s2232_s0 + $0x8] sm:$0xff]  ;;  %v25_v18 = vld [vmem:[%s2232_s0 + $0x10] sm:$0xff]  ;;  %vm991_vm4 = vcmask 254976  }
   0x2   :  { %v23_v1 = vld [vmem:[%s2232_s0] sm:$0xff]  ;;  %v423_v3 = vsel %vm421_vm0, %v319_v0, 0  ;;  %v40_v9 = vld [vmem:[%s2232_s0 + $0x88] sm:$0xff]  ;;  %v26_v19 = vld [vmem:[%s2232_s0 + $0x18] sm:$0xff] }
   0x3   :  { %v1086_v4 = vld [vmem:[%s2233_s1] ss:$0 sm:$0xff]  ;;  %432 = vmatpush.bf16.msra.mxu0 %v423_v3  ;;  %1033 = vmatpush.bf16.msra.mxu1 %v423_v3  ;;  %v41_v24 = vld [vmem:[%s2232_s0 + $0x90] sm:$0xff]  ;;  %v42_v25 = vld [vmem:[%s2232_s0 + $0x98] sm:$0xff] }
   0x4   :  { %v1091_v5 = vld [vmem:[%s2234_s2] ss:$0 sm:$0xff]  ;;  %v91_v6 = vmul.f32 %v1086_v4, %v23_v1  ;;  %v92_v7 = vmul.f32 %v1086_v4, %v24_v2  ;;  %1034 = vmatpush.bf16.msra.mxu2 %v423_v3  ;;  %v108_v11 = vmul.f32 %v1086_v4, %v40_v9  ;;  %1035 = vmatpush.bf16.msra.mxu3 %v423_v3  ;;  %v56_v39 = vld [vmem:[%s2232_s0 + $0x108] sm:$0xff]  ;;  %v57_v1 = vld [vmem:[%s2232_s0 + $0x110] sm:$0xff] }
   0x5   :  { %v39_v8 = vld [vmem:[%s2232_s0 + $0x80] sm:$0xff]  ;;  %v93_v26 = vmul.f32 %v1086_v4, %v25_v18  ;;  %v94_v27 = vmul.f32 %v1086_v4, %v26_v19  ;;  %v109_v28 = vmul.f32 %v1086_v4, %v41_v24  ;;  %v110_v29 = vmul.f32 %v1086_v4, %v42_v25  ;;  %v28_v46 = vld [vmem:[%s2232_s0 + $0x28] sm:$0xff]  ;;  %v58_v2 = vld [vmem:[%s2232_s0 + $0x118] sm:$0xff] }
   0x6   :  { %v107_v10 = vmul.f32 %v1086_v4, %v39_v8  ;;  %v159_v12 = vadd.f32 %v1091_v5, %v91_v6  ;;  %v160_v13 = vadd.f32 %v1091_v5, %v92_v7  ;;  %v176_v15 = vadd.f32 %v1091_v5, %v108_v11  ;;  %v55_v38 = vld [vmem:[%s2232_s0 + $0x100] sm:$0xff]  ;;  %v44_v51 = vld [vmem:[%s2232_s0 + $0xa8] sm:$0xff]  ;;  %v30_v11 = vld [vmem:[%s2232_s0 + $0x38] sm:$0xff] }
   0x7   :  { %v161_v30 = vadd.f32 %v1091_v5, %v93_v26  ;;  %v162_v31 = vadd.f32 %v1091_v5, %v94_v27  ;;  %v177_v32 = vadd.f32 %v1091_v5, %v109_v28  ;;  %v178_v33 = vadd.f32 %v1091_v5, %v110_v29  ;;  %v27_v45 = vld [vmem:[%s2232_s0 + $0x20] sm:$0xff] }
   0x8   :  { %v175_v14 = vadd.f32 %v1091_v5, %v107_v10  ;;  %v223_v16 = vmax.f32 %v159_v12, 0.0  ;;  %v224_v17 = vmax.f32 %v160_v13, 0.0  ;;  %v240_v21 = vmax.f32 %v176_v15, 0.0  ;;  %v43_v50 = vld [vmem:[%s2232_s0 + $0xa0] sm:$0xff]  ;;  %v29_v10 = vld [vmem:[%s2232_s0 + $0x30] sm:$0xff] }
   0x9   :  { %v225_v34 = vmax.f32 %v161_v30, 0.0  ;;  %v226_v35 = vmax.f32 %v162_v31, 0.0  ;;  %v241_v36 = vmax.f32 %v177_v32, 0.0  ;;  %v242_v37 = vmax.f32 %v178_v33, 0.0  ;;  %v45_v15 = vld [vmem:[%s2232_s0 + $0xb0] sm:$0xff]  ;;  %v59_v30 = vld [vmem:[%s2232_s0 + $0x120] sm:$0xff] }
   0xa   :  { %v239_v20 = vmax.f32 %v175_v14, 0.0  ;;  %v287_v22 = vpack.c.bf16 %v224_v17, %v223_v16  ;;  %v123_v40 = vmul.f32 %v1086_v4, %v55_v38  ;;  %v124_v41 = vmul.f32 %v1086_v4, %v56_v39  ;;  %v46_v16 = vld [vmem:[%s2232_s0 + $0xb8] sm:$0xff]  ;;  %v60_v31 = vld [vmem:[%s2232_s0 + $0x128] sm:$0xff]  ;;  %v71_v32 = vld [vmem:[%s2232_s0 + $0x180] sm:$0xff] }
   0xb   :  { %v288_v42 = vpack.c.bf16 %v226_v35, %v225_v34  ;;  %v296_v47 = vpack.c.bf16 %v242_v37, %v241_v36  ;;  %v95_v52 = vmul.f32 %v1086_v4, %v27_v45  ;;  %v96_v53 = vmul.f32 %v1086_v4, %v28_v46  ;;  %v72_v35 = vld [vmem:[%s2232_s0 + $0x188] sm:$0xff] }
   0xc   :  { %v295_v23 = vpack.c.bf16 %v240_v21, %v239_v20  ;;  %1001 = vmatmul.msk.bf16.vlgmr.msra.gmra.mxu0 %vm324_vm1, %v287_v22  ;;  %v191_v43 = vadd.f32 %v1091_v5, %v123_v40  ;;  %v192_v44 = vadd.f32 %v1091_v5, %v124_v41  ;;  %v111_v55 = vmul.f32 %v1086_v4, %v43_v50  ;;  %v47_v50 = vld [vmem:[%s2232_s0 + $0xc0] sm:$0xff] }
   0xd   :  { %v112_v56 = vmul.f32 %v1086_v4, %v44_v51  ;;  %v163_v57 = vadd.f32 %v1091_v5, %v95_v52  ;;  %v164_v58 = vadd.f32 %v1091_v5, %v96_v53  ;;  %v125_v3 = vmul.f32 %v1086_v4, %v57_v1  ;;  %v48_v51 = vld [vmem:[%s2232_s0 + $0xc8] sm:$0xff] }
   0xe   :  { %1009 = vmatmul.msk.bf16.vlgmr.msra.gmra.mxu1 %vm324_vm1, %v295_v23  ;;  %v255_v48 = vmax.f32 %v191_v43, 0.0  ;;  %v256_v49 = vmax.f32 %v192_v44, 0.0  ;;  %v179_v59 = vadd.f32 %v1091_v5, %v111_v55  ;;  %v126_v6 = vmul.f32 %v1086_v4, %v58_v2  ;;  %v32_v43 = vld [vmem:[%s2232_s0 + $0x48] sm:$0xff]  ;;  %v61_v2 = vld [vmem:[%s2232_s0 + $0x130] sm:$0xff] }
   0xf   :  { %v180_v60 = vadd.f32 %v1091_v5, %v112_v56  ;;  %v227_v61 = vmax.f32 %v163_v57, 0.0  ;;  %v228_v62 = vmax.f32 %v164_v58, 0.0  ;;  %v193_v8 = vadd.f32 %v1091_v5, %v125_v3  ;;  %v62_v3 = vld [vmem:[%s2232_s0 + $0x138] sm:$0xff] }
  0x10   :  { %v303_v54 = vpack.c.bf16 %v256_v49, %v255_v48  ;;  %v243_v63 = vmax.f32 %v179_v59, 0.0  ;;  %v194_v9 = vadd.f32 %v1091_v5, %v126_v6  ;;  %v97_v17 = vmul.f32 %v1086_v4, %v29_v10  ;;  %v73_v6 = vld [vmem:[%s2232_s0 + $0x190] sm:$0xff] }
  0x11   :  { %v244_v0 = vmax.f32 %v180_v60, 0.0  ;;  %v289_v7 = vpack.c.bf16 %v228_v62, %v227_v61  ;;  %v257_v13 = vmax.f32 %v193_v8, 0.0  ;;  %v98_v18 = vmul.f32 %v1086_v4, %v30_v11 }
  0x12   :  { %1017 = vmatmul.msk.bf16.vlgmr.msra.gmra.mxu2 %vm324_vm1, %v303_v54  ;;  %v258_v14 = vmax.f32 %v194_v9, 0.0  ;;  %v113_v20 = vmul.f32 %v1086_v4, %v45_v15  ;;  %v114_v21 = vmul.f32 %v1086_v4, %v46_v16  ;;  %v165_v22 = vadd.f32 %v1091_v5, %v97_v17  ;;  %v74_v9 = vld [vmem:[%s2232_s0 + $0x198] sm:$0xff]  ;;  %v33_v16 = vld [vmem:[%s2232_s0 + $0x50] sm:$0xff] }
  0x13   :  { %v297_v12 = vpack.c.bf16 %v244_v0, %v243_v63  ;;  %v166_v23 = vadd.f32 %v1091_v5, %v98_v18  ;;  %v127_v33 = vmul.f32 %v1086_v4, %v59_v30  ;;  %v128_v34 = vmul.f32 %v1086_v4, %v60_v31  ;;  %v34_v17 = vld [vmem:[%s2232_s0 + $0x58] sm:$0xff] }
  0x14   :  { %v304_v19 = vpack.c.bf16 %v258_v14, %v257_v13  ;;  %v181_v24 = vadd.f32 %v1091_v5, %v113_v20  ;;  %v182_v25 = vadd.f32 %v1091_v5, %v114_v21  ;;  %v229_v26 = vmax.f32 %v165_v22, 0.0 }
  0x15   :  { %v230_v27 = vmax.f32 %v166_v23, 0.0  ;;  %v139_v36 = vmul.f32 %v1086_v4, %v71_v32  ;;  %v140_v37 = vmul.f32 %v1086_v4, %v72_v35  ;;  %v195_v39 = vadd.f32 %v1091_v5, %v127_v33 }
  0x16   :  { %v245_v28 = vmax.f32 %v181_v24, 0.0  ;;  %v246_v29 = vmax.f32 %v182_v25, 0.0  ;;  %v196_v40 = vadd.f32 %v1091_v5, %v128_v34  ;;  %v100_v53 = vmul.f32 %v1086_v4, %v32_v43  ;;  %v49_v24 = vld [vmem:[%s2232_s0 + $0xd0] sm:$0xff]  ;;  %v50_v25 = vld [vmem:[%s2232_s0 + $0xd8] sm:$0xff] }
  0x17   :  { %v290_v38 = vpack.c.bf16 %v230_v27, %v229_v26  ;;  %v207_v41 = vadd.f32 %v1091_v5, %v139_v36  ;;  %v208_v45 = vadd.f32 %v1091_v5, %v140_v37  ;;  %v259_v46 = vmax.f32 %v195_v39, 0.0 }
  0x18   :  { %v298_v44 = vpack.c.bf16 %v246_v29, %v245_v28  ;;  %v115_v56 = vmul.f32 %v1086_v4, %v47_v50  ;;  %v116_v57 = vmul.f32 %v1086_v4, %v48_v51  ;;  %v168_v59 = vadd.f32 %v1091_v5, %v100_v53  ;;  %v36_v53 = vld [vmem:[%s2232_s0 + $0x68] sm:$0xff] }
  0x19   :  { %v271_v48 = vmax.f32 %v207_v41, 0.0  ;;  %v272_v49 = vmax.f32 %v208_v45, 0.0  ;;  %v130_v8 = vmul.f32 %v1086_v4, %v62_v3  ;;  %v141_v10 = vmul.f32 %v1086_v4, %v73_v6  ;;  %v64_v41 = vld [vmem:[%s2232_s0 + $0x148] sm:$0xff] }
  0x1a   :  { %v183_v60 = vadd.f32 %v1091_v5, %v115_v56  ;;  %v184_v61 = vadd.f32 %v1091_v5, %v116_v57  ;;  %v232_v63 = vmax.f32 %v168_v59, 0.0  ;;  %v142_v11 = vmul.f32 %v1086_v4, %v74_v9  ;;  %v76_v45 = vld [vmem:[%s2232_s0 + $0x1a8] sm:$0xff] }
  0x1b   :  { %v311_v55 = vpack.c.bf16 %v272_v49, %v271_v48  ;;  %v198_v14 = vadd.f32 %v1091_v5, %v130_v8  ;;  %v209_v15 = vadd.f32 %v1091_v5, %v141_v10  ;;  %v101_v26 = vmul.f32 %v1086_v4, %v33_v16  ;;  %v77_v16 = vld [vmem:[%s2232_s0 + $0x1b0] sm:$0xff] }
  0x1c   :  { %1002 = vmatmul.msk.bf16.gmra.mxu0 %vm324_vm1, %v288_v42  ;;  %v31_v42 = vld [vmem:[%s2232_s0 + $0x40] sm:$0xff]  ;;  %v247_v0 = vmax.f32 %v183_v60, 0.0  ;;  %v248_v1 = vmax.f32 %v184_v61, 0.0  ;;  %v102_v27 = vmul.f32 %v1086_v4, %v34_v17  ;;  %v117_v30 = vmul.f32 %v1086_v4, %v49_v24  ;;  %v52_v61 = vld [vmem:[%s2232_s0 + $0xe8] sm:$0xff] }
  0x1d   :  { %v99_v52 = vmul.f32 %v1086_v4, %v31_v42  ;;  %1025 = vmatmul.msk.bf16.vlgmr.msra.gmra.mxu3 %vm324_vm1, %v311_v55  ;;  %v262_v21 = vmax.f32 %v198_v14, 0.0  ;;  %v273_v22 = vmax.f32 %v209_v15, 0.0  ;;  %v118_v31 = vmul.f32 %v1086_v4, %v50_v25  ;;  %v75_v42 = vld [vmem:[%s2232_s0 + $0x1a0] sm:$0xff]  ;;  %v65_v14 = vld [vmem:[%s2232_s0 + $0x150] sm:$0xff]  ;;  %v66_v15 = vld [vmem:[%s2232_s0 + $0x158] sm:$0xff] }
  0x1e   :  { %1010 = vmatmul.msk.bf16.gmra.mxu1 %vm324_vm1, %v296_v47  ;;  %v260_v47 = vmax.f32 %v196_v40, 0.0  ;;  %v299_v18 = vpack.c.bf16 %v248_v1, %v247_v0  ;;  %v169_v32 = vadd.f32 %v1091_v5, %v101_v26  ;;  %v170_v33 = vadd.f32 %v1091_v5, %v102_v27  ;;  %v63_v40 = vld [vmem:[%s2232_s0 + $0x140] sm:$0xff]  ;;  %v37_v26 = vld [vmem:[%s2232_s0 + $0x70] sm:$0xff]  ;;  %v38_v27 = vld [vmem:[%s2232_s0 + $0x78] sm:$0xff] }
  0x1f   :  { %v167_v58 = vadd.f32 %v1091_v5, %v99_v52  ;;  %v185_v34 = vadd.f32 %v1091_v5, %v117_v30  ;;  %v186_v35 = vadd.f32 %v1091_v5, %v118_v31  ;;  %v131_v43 = vmul.f32 %v1086_v4, %v63_v40  ;;  %v35_v52 = vld [vmem:[%s2232_s0 + $0x60] sm:$0xff] }
  0x20   :  { %v305_v54 = vpack.c.bf16 %v260_v47, %v259_v46  ;;  %v233_v36 = vmax.f32 %v169_v32, 0.0  ;;  %v234_v37 = vmax.f32 %v170_v33, 0.0  ;;  %v143_v46 = vmul.f32 %v1086_v4, %v75_v42  ;;  %v51_v60 = vld [vmem:[%s2232_s0 + $0xe0] sm:$0xff] }
  0x21   :  { %v231_v62 = vmax.f32 %v167_v58, 0.0  ;;  %v250_v39 = vmax.f32 %v186_v35, 0.0  ;;  %v144_v47 = vmul.f32 %v1086_v4, %v76_v45  ;;  %v199_v49 = vadd.f32 %v1091_v5, %v131_v43  ;;  %v54_v35 = vld [vmem:[%s2232_s0 + $0xf8] sm:$0xff] }
  0x22   :  { %1018 = vmatmul.msk.bf16.gmra.mxu2 %vm324_vm1, %v304_v19  ;;  %v210_v19 = vadd.f32 %v1091_v5, %v142_v11  ;;  %v292_v48 = vpack.c.bf16 %v234_v37, %v233_v36  ;;  %v211_v51 = vadd.f32 %v1091_v5, %v143_v46  ;;  %v120_v3 = vmul.f32 %v1086_v4, %v52_v61 }
  0x23   :  { %v212_v55 = vadd.f32 %v1091_v5, %v144_v47  ;;  %v263_v56 = vmax.f32 %v199_v49, 0.0  ;;  %v133_v17 = vmul.f32 %v1086_v4, %v65_v14  ;;  %v105_v36 = vmul.f32 %v1086_v4, %v37_v26  ;;  %v82_v14 = vld [vmem:[%s2232_s0 + $0x1d8] sm:$0xff] }
  0x24   :  { %v274_v23 = vmax.f32 %v210_v19, 0.0  ;;  %v275_v58 = vmax.f32 %v211_v51, 0.0  ;;  %v188_v9 = vadd.f32 %v1091_v5, %v120_v3  ;;  %v78_v19 = vld [vmem:[%s2232_s0 + $0x1b8] sm:$0xff]  ;;  %v106_v37 = vmul.f32 %v1086_v4, %v38_v27  ;;  %v68_v51 = vld [vmem:[%s2232_s0 + $0x168] sm:$0xff] }
  0x25   :  { %v276_v59 = vmax.f32 %v212_v55, 0.0  ;;  %v173_v42 = vadd.f32 %v1091_v5, %v105_v36  ;;  %v80_v55 = vld [vmem:[%s2232_s0 + $0x1c8] sm:$0xff] }
  0x26   :  { %v312_v29 = vpack.c.bf16 %v274_v23, %v273_v22  ;;  %v201_v23 = vadd.f32 %v1091_v5, %v133_v17  ;;  %v174_v43 = vadd.f32 %v1091_v5, %v106_v37 }
  0x27   :  { %v313_v1 = vpack.c.bf16 %v276_v59, %v275_v58  ;;  %v237_v46 = vmax.f32 %v173_v42, 0.0 }
  0x28   :  { %v265_v30 = vmax.f32 %v201_v23, 0.0  ;;  %v238_v47 = vmax.f32 %v174_v43, 0.0 }
  0x2a   :  { %v294_v58 = vpack.c.bf16 %v238_v47, %v237_v46 }
  0x2c   :  { %1003 = vmatmul.msk.bf16.gmra.mxu0 %vm324_vm1, %v289_v7  ;;  %v129_v7 = vmul.f32 %v1086_v4, %v61_v2  ;;  %v119_v2 = vmul.f32 %v1086_v4, %v51_v60 }
  0x2d   :  { %1026 = vmatmul.msk.bf16.gmra.mxu3 %vm324_vm1, %v312_v29 }
  0x2e   :  { %1011 = vmatmul.msk.bf16.gmra.mxu1 %vm324_vm1, %v297_v12  ;;  %v291_v12 = vpack.c.bf16 %v232_v63, %v231_v62  ;;  %v197_v13 = vadd.f32 %v1091_v5, %v129_v7  ;;  %v103_v62 = vmul.f32 %v1086_v4, %v35_v52  ;;  %v104_v63 = vmul.f32 %v1086_v4, %v36_v53  ;;  %v79_v52 = vld [vmem:[%s2232_s0 + $0x1c0] sm:$0xff] }
  0x2f   :  { %v187_v8 = vadd.f32 %v1091_v5, %v119_v2 }
  0x30   :  { %v261_v20 = vmax.f32 %v197_v13, 0.0  ;;  %v171_v6 = vadd.f32 %v1091_v5, %v103_v62  ;;  %v172_v7 = vadd.f32 %v1091_v5, %v104_v63  ;;  %v252_v13 = vmax.f32 %v188_v9, 0.0  ;;  %v70_v9 = vld [vmem:[%s2232_s0 + $0x178] sm:$0xff] }
  0x32   :  { %1019 = vmatmul.msk.bf16.gmra.mxu2 %vm324_vm1, %v305_v54  ;;  %v306_v28 = vpack.c.bf16 %v262_v21, %v261_v20  ;;  %v235_v10 = vmax.f32 %v171_v6, 0.0  ;;  %v236_v11 = vmax.f32 %v172_v7, 0.0  ;;  %v145_v20 = vmul.f32 %v1086_v4, %v77_v16 }
  0x33   :  { %v146_v21 = vmul.f32 %v1086_v4, %v78_v19  ;;  %v150_v16 = vmul.f32 %v1086_v4, %v82_v14 }
  0x34   :  { %v293_v22 = vpack.c.bf16 %v236_v11, %v235_v10  ;;  %v213_v25 = vadd.f32 %v1091_v5, %v145_v20  ;;  %v81_v10 = vld [vmem:[%s2232_s0 + $0x1d0] sm:$0xff]  ;;  %v1407_v11 = vld [vmem:[%s2235_s4] ss:$0 sm:$0xff] }
  0x35   :  { %v214_v29 = vadd.f32 %v1091_v5, %v146_v21  ;;  %v218_v21 = vadd.f32 %v1091_v5, %v150_v16 }
  0x36   :  { %v277_v32 = vmax.f32 %v213_v25, 0.0 }
  0x37   :  { %v278_v33 = vmax.f32 %v214_v29, 0.0 }
  0x3c   :  { %1004 = vmatmul.msk.bf16.gmra.mxu0 %vm324_vm1, %v290_v38  ;;  %v249_v38 = vmax.f32 %v185_v34, 0.0  ;;  %v53_v34 = vld [vmem:[%s2232_s0 + $0xf0] sm:$0xff] }
  0x3d   :  { %1027 = vmatmul.msk.bf16.gmra.mxu3 %vm324_vm1, %v313_v1  ;;  %v121_v40 = vmul.f32 %v1086_v4, %v53_v34 }
  0x3e   :  { %1012 = vmatmul.msk.bf16.gmra.mxu1 %vm324_vm1, %v298_v44  ;;  %v132_v44 = vmul.f32 %v1086_v4, %v64_v41  ;;  %v300_v54 = vpack.c.bf16 %v250_v39, %v249_v38  ;;  %v314_v39 = vpack.c.bf16 %v278_v33, %v277_v32  ;;  %v122_v41 = vmul.f32 %v1086_v4, %v54_v35 }
  0x40   :  { %v200_v50 = vadd.f32 %v1091_v5, %v132_v44  ;;  %v189_v44 = vadd.f32 %v1091_v5, %v121_v40  ;;  %v190_v45 = vadd.f32 %v1091_v5, %v122_v41  ;;  %v83_v40 = vld [vmem:[%s2232_s0 + $0x1e0] sm:$0xff]  ;;  %v84_v41 = vld [vmem:[%s2232_s0 + $0x1e8] sm:$0xff] }
  0x42   :  { %1020 = vmatmul.msk.bf16.gmra.mxu2 %vm324_vm1, %v306_v28  ;;  %v264_v57 = vmax.f32 %v200_v50, 0.0  ;;  %v254_v49 = vmax.f32 %v190_v45, 0.0  ;;  %v67_v50 = vld [vmem:[%s2232_s0 + $0x160] sm:$0xff]  ;;  %v152_v45 = vmul.f32 %v1086_v4, %v84_v41 }
  0x43   :  { %v135_v53 = vmul.f32 %v1086_v4, %v67_v50 }
  0x44   :  { %v307_v0 = vpack.c.bf16 %v264_v57, %v263_v56  ;;  %v147_v56 = vmul.f32 %v1086_v4, %v79_v52  ;;  %v148_v57 = vmul.f32 %v1086_v4, %v80_v55 }
  0x45   :  { %v203_v59 = vadd.f32 %v1091_v5, %v135_v53 }
  0x46   :  { %v215_v61 = vadd.f32 %v1091_v5, %v147_v56  ;;  %v216_v63 = vadd.f32 %v1091_v5, %v148_v57 }
  0x48   :  { %v279_v2 = vmax.f32 %v215_v61, 0.0  ;;  %v280_v3 = vmax.f32 %v216_v63, 0.0 }
  0x4a   :  { %v315_v7 = vpack.c.bf16 %v280_v3, %v279_v2 }
  0x4c   :  { %1005 = vmatmul.msk.bf16.gmra.mxu0 %vm324_vm1, %v291_v12  ;;  %v251_v12 = vmax.f32 %v187_v8, 0.0  ;;  %v69_v8 = vld [vmem:[%s2232_s0 + $0x170] sm:$0xff] }
  0x4d   :  { %1028 = vmatmul.msk.bf16.gmra.mxu3 %vm324_vm1, %v314_v39 }
  0x4e   :  { %1013 = vmatmul.msk.bf16.gmra.mxu1 %vm324_vm1, %v299_v18  ;;  %v134_v18 = vmul.f32 %v1086_v4, %v66_v15  ;;  %v301_v28 = vpack.c.bf16 %v252_v13, %v251_v12  ;;  %v137_v12 = vmul.f32 %v1086_v4, %v69_v8  ;;  %v138_v13 = vmul.f32 %v1086_v4, %v70_v9  ;;  %v86_v8 = vld [vmem:[%s2232_s0 + $0x1f8] sm:$0xff] }
  0x4f   :  { %v149_v15 = vmul.f32 %v1086_v4, %v81_v10 }
  0x50   :  { %v202_v24 = vadd.f32 %v1091_v5, %v134_v18  ;;  %v205_v17 = vadd.f32 %v1091_v5, %v137_v12  ;;  %v206_v18 = vadd.f32 %v1091_v5, %v138_v13  ;;  %v154_v12 = vmul.f32 %v1086_v4, %v86_v8 }
  0x51   :  { %v217_v19 = vadd.f32 %v1091_v5, %v149_v15 }
  0x52   :  { %1021 = vmatmul.msk.bf16.gmra.mxu2 %vm324_vm1, %v307_v0  ;;  %v266_v31 = vmax.f32 %v202_v24, 0.0  ;;  %v267_v0 = vmax.f32 %v203_v59, 0.0  ;;  %v269_v24 = vmax.f32 %v205_v17, 0.0  ;;  %v270_v25 = vmax.f32 %v206_v18, 0.0 }
  0x53   :  { %v281_v26 = vmax.f32 %v217_v19, 0.0  ;;  %v222_v16 = vadd.f32 %v1091_v5, %v154_v12 }
  0x54   :  { %v308_v38 = vpack.c.bf16 %v266_v31, %v265_v30  ;;  %v310_v29 = vpack.c.bf16 %v270_v25, %v269_v24 }
  0x5c   :  { %1006 = vmatmul.msk.bf16.gmra.mxu0 %vm324_vm1, %v292_v48  ;;  %v253_v48 = vmax.f32 %v189_v44, 0.0  ;;  %v151_v44 = vmul.f32 %v1086_v4, %v83_v40 }
  0x5d   :  { %1029 = vmatmul.msk.bf16.gmra.mxu3 %vm324_vm1, %v315_v7  ;;  %v85_v7 = vld [vmem:[%s2232_s0 + $0x1f0] sm:$0xff] }
  0x5e   :  { %1014 = vmatmul.msk.bf16.gmra.mxu1 %vm324_vm1, %v300_v54  ;;  %v136_v54 = vmul.f32 %v1086_v4, %v68_v51  ;;  %v302_v62 = vpack.c.bf16 %v254_v49, %v253_v48  ;;  %v219_v47 = vadd.f32 %v1091_v5, %v151_v44  ;;  %v220_v48 = vadd.f32 %v1091_v5, %v152_v45 }
  0x5f   :  { %v153_v10 = vmul.f32 %v1086_v4, %v85_v7 }
  0x60   :  { %v204_v60 = vadd.f32 %v1091_v5, %v136_v54  ;;  %v283_v52 = vmax.f32 %v219_v47, 0.0  ;;  %v284_v53 = vmax.f32 %v220_v48, 0.0 }
  0x61   :  { %v221_v15 = vadd.f32 %v1091_v5, %v153_v10 }
  0x62   :  { %1022 = vmatmul.msk.bf16.gmra.mxu2 %vm324_vm1, %v308_v38  ;;  %v268_v1 = vmax.f32 %v204_v60, 0.0  ;;  %v317_v57 = vpack.c.bf16 %v284_v53, %v283_v52 }
  0x64   :  { %v309_v6 = vpack.c.bf16 %v268_v1, %v267_v0 }
  0x6c   :  { %1007 = vmatmul.msk.bf16.gmra.mxu0 %vm324_vm1, %v293_v22 }
  0x6e   :  { %1015 = vmatmul.msk.bf16.gmra.mxu1 %vm324_vm1, %v301_v28  ;;  %v282_v28 = vmax.f32 %v218_v21, 0.0  ;;  %v285_v21 = vmax.f32 %v221_v15, 0.0 }
  0x70   :  { %v316_v30 = vpack.c.bf16 %v282_v28, %v281_v26 }
  0x72   :  { %1023 = vmatmul.msk.bf16.gmra.mxu2 %vm324_vm1, %v309_v6  ;;  %1030 = vmatmul.msk.bf16.gmra.mxu3 %vm324_vm1, %v316_v30 }
  0x7c   :  { %1008 = vmatmul.msk.bf16.gmra.mxu0 %vm324_vm1, %v294_v58 }
  0x7e   :  { %1016 = vmatmul.msk.bf16.gmra.mxu1 %vm324_vm1, %v302_v62 }
  0x82   :  { %1024 = vmatmul.msk.bf16.gmra.mxu2 %vm324_vm1, %v310_v29  ;;  %1031 = vmatmul.msk.bf16.gmra.mxu3 %vm324_vm1, %v317_v57 }
  0x89   :  { %v434_v20 = vpop.f32.mrf.mxu0 }
  0x8a   :  { %v435_v22 = vadd.f32 %v1407_v11, %v434_v20 }
  0x8b   :  { %v474_v23 = vpop.f32.mrf.mxu1 }
  0x8c   :  { %v1422_v27 = vadd.f32 %v1407_v11, %v474_v23  ;;  %595 = vst.msk [vmem:[%s2236_s5] sm:$0xff] %vm594_vm2, %v435_v22  ;;  %v792_v32 = vmul.f32 %v435_v22, %v435_v22  ;;  %v659_v36 = vsel %vm594_vm2, %v435_v22, 0.0  ;;  %v286_v22 = vmax.f32 %v222_v16, 0.0 }
  0x8e   :  { %611 = vst.msk [vmem:[%s2236_s5 + $0x80] sm:$0xff] %vm594_vm2, %v1422_v27  ;;  %v856_v42 = vsel %vm594_vm2, %v792_v32, 0.0  ;;  %v318_v26 = vpack.c.bf16 %v286_v22, %v285_v21 }
  0x91   :  { %v436_v31 = vpop.f32.mrf.mxu0 }
  0x92   :  { %v437_v33 = vadd.f32 %v1407_v11, %v436_v31  ;;  %1032 = vmatmul.msk.bf16.gmra.mxu3 %vm324_vm1, %v318_v26 }
  0x93   :  { %v476_v34 = vpop.f32.mrf.mxu1 }
  0x94   :  { %v1437_v35 = vadd.f32 %v1407_v11, %v476_v34  ;;  %596 = vst.msk [vmem:[%s2236_s5 + $0x8] sm:$0xff] %vm594_vm2, %v437_v33  ;;  %v660_v37 = vsel %vm594_vm2, %v437_v33, 0.0  ;;  %v793_v38 = vmul.f32 %v437_v33, %v437_v33 }
  0x95   :  { %v661_v39 = vadd.f32 %v660_v37, %v659_v36  ;;  %v514_v62 = vpop.f32.mrf.mxu2 }
  0x96   :  { %612 = vst.msk [vmem:[%s2236_s5 + $0x88] sm:$0xff] %vm594_vm2, %v1437_v35  ;;  %v857_v43 = vsel %vm594_vm2, %v793_v38, 0.0  ;;  %v1502_v14 = vadd.f32 %v1407_v11, %v514_v62 }
  0x97   :  { %v858_v46 = vadd.f32 %v857_v43, %v856_v42 }
  0x98   :  { %627 = vst.msk [vmem:[%s2236_s5 + $0x100] sm:$0xff] %vm594_vm2, %v1502_v14 }
  0x99   :  { %v439_v49 = vpop.f32.mrf.mxu0 }
  0x9a   :  { %v440_v50 = vadd.f32 %v1407_v11, %v439_v49 }
  0x9b   :  { %v479_v51 = vpop.f32.mrf.mxu1 }
  0x9c   :  { %v1464_v54 = vadd.f32 %v1407_v11, %v479_v51  ;;  %597 = vst.msk [vmem:[%s2236_s5 + $0x10] sm:$0xff] %vm594_vm2, %v440_v50  ;;  %v662_v55 = vsel %vm594_vm2, %v440_v50, 0.0  ;;  %v794_v56 = vmul.f32 %v440_v50, %v440_v50 }
  0x9d   :  { %v663_v58 = vadd.f32 %v662_v55, %v661_v39  ;;  %v516_v18 = vpop.f32.mrf.mxu2 }
  0x9e   :  { %613 = vst.msk [vmem:[%s2236_s5 + $0x90] sm:$0xff] %vm594_vm2, %v1464_v54  ;;  %v859_v59 = vsel %vm594_vm2, %v794_v56, 0.0  ;;  %v1513_v4 = vadd.f32 %v1407_v11, %v516_v18 }
  0x9f   :  { %v860_v60 = vadd.f32 %v859_v59, %v858_v46 }
  0xa0   :  { %628 = vst.msk [vmem:[%s2236_s5 + $0x108] sm:$0xff] %vm594_vm2, %v1513_v4  ;;  %v554_v47 = vpop.f32.mrf.mxu3 }
  0xa1   :  { %v441_v61 = vpop.f32.mrf.mxu0  ;;  %v1607_v50 = vadd.f32 %v1407_v11, %v554_v47 }
  0xa2   :  { %v442_v63 = vadd.f32 %v1407_v11, %v441_v61 }
  0xa3   :  { %v481_v0 = vpop.f32.mrf.mxu1  ;;  %643 = vst.msk [vmem:[%s2236_s5 + $0x180] sm:$0xff] %vm594_vm2, %v1607_v50 }
  0xa4   :  { %v1480_v1 = vadd.f32 %v1407_v11, %v481_v0  ;;  %598 = vst.msk [vmem:[%s2236_s5 + $0x18] sm:$0xff] %vm594_vm2, %v442_v63  ;;  %v664_v2 = vsel %vm594_vm2, %v442_v63, 0.0  ;;  %v795_v3 = vmul.f32 %v442_v63, %v442_v63 }
  0xa5   :  { %v665_v6 = vadd.f32 %v664_v2, %v663_v58  ;;  %v519_v31 = vpop.f32.mrf.mxu2 }
  0xa6   :  { %614 = vst.msk [vmem:[%s2236_s5 + $0x98] sm:$0xff] %vm594_vm2, %v1480_v1  ;;  %v861_v9 = vsel %vm594_vm2, %v795_v3, 0.0  ;;  %v1556_v36 = vadd.f32 %v1407_v11, %v519_v31 }
  0xa7   :  { %v862_v13 = vadd.f32 %v861_v9, %v860_v60 }
  0xa8   :  { %629 = vst.msk [vmem:[%s2236_s5 + $0x110] sm:$0xff] %vm594_vm2, %v1556_v36  ;;  %v556_v57 = vpop.f32.mrf.mxu3 }
  0xa9   :  { %v444_v17 = vpop.f32.mrf.mxu0  ;;  %v1629_v59 = vadd.f32 %v1407_v11, %v556_v57 }
  0xaa   :  { %v445_v19 = vadd.f32 %v1407_v11, %v444_v17 }
  0xab   :  { %v484_v20 = vpop.f32.mrf.mxu1  ;;  %644 = vst.msk [vmem:[%s2236_s5 + $0x188] sm:$0xff] %vm594_vm2, %v1629_v59 }
  0xac   :  { %v1516_v23 = vadd.f32 %v1407_v11, %v484_v20  ;;  %599 = vst.msk [vmem:[%s2236_s5 + $0x20] sm:$0xff] %vm594_vm2, %v445_v19  ;;  %v666_v5 = vsel %vm594_vm2, %v445_v19, 0.0  ;;  %v796_v24 = vmul.f32 %v445_v19, %v445_v19 }
  0xad   :  { %v1523_v25 = vadd.f32 %v666_v5, %v665_v6  ;;  %v521_v38 = vpop.f32.mrf.mxu2 }
  0xae   :  { %615 = vst.msk [vmem:[%s2236_s5 + $0xa0] sm:$0xff] %vm594_vm2, %v1516_v23  ;;  %v863_v28 = vsel %vm594_vm2, %v796_v24, 0.0  ;;  %v1567_v41 = vadd.f32 %v1407_v11, %v521_v38 }
  0xaf   :  { %v1536_v29 = vadd.f32 %v863_v28, %v862_v13 }
  0xb0   :  { %630 = vst.msk [vmem:[%s2236_s5 + $0x118] sm:$0xff] %vm594_vm2, %v1567_v41  ;;  %v559_v0 = vpop.f32.mrf.mxu3 }
  0xb1   :  { %v446_v30 = vpop.f32.mrf.mxu0  ;;  %v1671_v6 = vadd.f32 %v1407_v11, %v559_v0 }
  0xb2   :  { %v1540_v32 = vadd.f32 %v1407_v11, %v446_v30 }
  0xb3   :  { %v486_v33 = vpop.f32.mrf.mxu1  ;;  %645 = vst.msk [vmem:[%s2236_s5 + $0x190] sm:$0xff] %vm594_vm2, %v1671_v6 }
  0xb4   :  { %v1543_v34 = vadd.f32 %v1407_v11, %v486_v33  ;;  %600 = vst.msk [vmem:[%s2236_s5 + $0x28] sm:$0xff] %vm594_vm2, %v1540_v32  ;;  %v797_v38 = vmul.f32 %v1540_v32, %v1540_v32 }
  0xb5   :  { %v524_v44 = vpop.f32.mrf.mxu2 }
  0xb6   :  { %616 = vst.msk [vmem:[%s2236_s5 + $0xa8] sm:$0xff] %vm594_vm2, %v1543_v34  ;;  %v1604_v49 = vadd.f32 %v1407_v11, %v524_v44  ;;  %v668_v44 = vsel %vm594_vm2, %v1540_v32, 0.0  ;;  %v865_v47 = vsel %vm594_vm2, %v797_v38, 0.0 }
  0xb8   :  { %631 = vst.msk [vmem:[%s2236_s5 + $0x120] sm:$0xff] %vm594_vm2, %v1604_v49  ;;  %v561_v13 = vpop.f32.mrf.mxu3 }
  0xb9   :  { %v449_v37 = vpop.f32.mrf.mxu0  ;;  %v1693_v16 = vadd.f32 %v1407_v11, %v561_v13 }
  0xba   :  { %v1564_v39 = vadd.f32 %v1407_v11, %v449_v37 }
  0xbb   :  { %v489_v40 = vpop.f32.mrf.mxu1  ;;  %646 = vst.msk [vmem:[%s2236_s5 + $0x198] sm:$0xff] %vm594_vm2, %v1693_v16 }
  0xbc   :  { %v1570_v42 = vadd.f32 %v1407_v11, %v489_v40  ;;  %601 = vst.msk [vmem:[%s2236_s5 + $0x30] sm:$0xff] %vm594_vm2, %v1564_v39  ;;  %v670_v32 = vsel %vm594_vm2, %v1564_v39, 0.0 }
  0xbd   :  { %v526_v52 = vpop.f32.mrf.mxu2 }
  0xbe   :  { %617 = vst.msk [vmem:[%s2236_s5 + $0xb0] sm:$0xff] %vm594_vm2, %v1570_v42  ;;  %v1623_v56 = vadd.f32 %v1407_v11, %v526_v52  ;;  %v669_v52 = vadd.f32 %v668_v44, %v1523_v25 }
  0xc0   :  { %632 = vst.msk [vmem:[%s2236_s5 + $0x128] sm:$0xff] %vm594_vm2, %v1623_v56  ;;  %v564_v21 = vpop.f32.mrf.mxu3 }
  0xc1   :  { %v451_v43 = vpop.f32.mrf.mxu0  ;;  %v1738_v37 = vadd.f32 %v1407_v11, %v564_v21 }
  0xc2   :  { %v1588_v45 = vadd.f32 %v1407_v11, %v451_v43 }
  0xc3   :  { %v491_v46 = vpop.f32.mrf.mxu1  ;;  %647 = vst.msk [vmem:[%s2236_s5 + $0x1a0] sm:$0xff] %vm594_vm2, %v1738_v37 }
  0xc4   :  { %v1591_v48 = vadd.f32 %v1407_v11, %v491_v46  ;;  %602 = vst.msk [vmem:[%s2236_s5 + $0x38] sm:$0xff] %vm594_vm2, %v1588_v45  ;;  %v798_v46 = vmul.f32 %v1564_v39, %v1564_v39 }
  0xc5   :  { %v529_v61 = vpop.f32.mrf.mxu2 }
  0xc6   :  { %618 = vst.msk [vmem:[%s2236_s5 + $0xb8] sm:$0xff] %vm594_vm2, %v1591_v48  ;;  %v1668_v3 = vadd.f32 %v1407_v11, %v529_v61  ;;  %v867_v39 = vsel %vm594_vm2, %v798_v46, 0.0 }
  0xc8   :  { %633 = vst.msk [vmem:[%s2236_s5 + $0x130] sm:$0xff] %vm594_vm2, %v1668_v3  ;;  %v566_v31 = vpop.f32.mrf.mxu3 }
  0xc9   :  { %v454_v51 = vpop.f32.mrf.mxu0  ;;  %v1756_v43 = vadd.f32 %v1407_v11, %v566_v31 }
  0xca   :  { %v1615_v53 = vadd.f32 %v1407_v11, %v454_v51  ;;  %v799_v51 = vmul.f32 %v1588_v45, %v1588_v45 }
  0xcb   :  { %v494_v55 = vpop.f32.mrf.mxu1  ;;  %648 = vst.msk [vmem:[%s2236_s5 + $0x1a8] sm:$0xff] %vm594_vm2, %v1756_v43 }
  0xcc   :  { %v1626_v58 = vadd.f32 %v1407_v11, %v494_v55  ;;  %603 = vst.msk [vmem:[%s2236_s5 + $0x40] sm:$0xff] %vm594_vm2, %v1615_v53  ;;  %v800_v61 = vmul.f32 %v1615_v53, %v1615_v53  ;;  %v869_v13 = vsel %vm594_vm2, %v799_v51, 0.0 }
  0xcd   :  { %v531_v8 = vpop.f32.mrf.mxu2 }
  0xce   :  { %619 = vst.msk [vmem:[%s2236_s5 + $0xc0] sm:$0xff] %vm594_vm2, %v1626_v58  ;;  %v1687_v12 = vadd.f32 %v1407_v11, %v531_v8  ;;  %v671_v8 = vadd.f32 %v670_v32, %v669_v52 }
  0xd0   :  { %634 = vst.msk [vmem:[%s2236_s5 + $0x138] sm:$0xff] %vm594_vm2, %v1687_v12  ;;  %v569_v25 = vpop.f32.mrf.mxu3 }
  0xd1   :  { %v456_v60 = vpop.f32.mrf.mxu0 }
  0xd2   :  { %v1652_v62 = vadd.f32 %v1407_v11, %v456_v60  ;;  %v672_v60 = vsel %vm594_vm2, %v1588_v45, 0.0 }
  0xd3   :  { %v496_v63 = vpop.f32.mrf.mxu1 }
  0xd4   :  { %v1655_v2 = vadd.f32 %v1407_v11, %v496_v63  ;;  %604 = vst.msk [vmem:[%s2236_s5 + $0x48] sm:$0xff] %vm594_vm2, %v1652_v62  ;;  %v801_v45 = vmul.f32 %v1652_v62, %v1652_v62  ;;  %v676_v21 = vsel %vm594_vm2, %v1652_v62, 0.0 }
  0xd5   :  { %v534_v18 = vpop.f32.mrf.mxu2 }
  0xd6   :  { %620 = vst.msk [vmem:[%s2236_s5 + $0xc8] sm:$0xff] %vm594_vm2, %v1655_v2  ;;  %v1732_v30 = vadd.f32 %v1407_v11, %v534_v18 }
  0xd8   :  { %635 = vst.msk [vmem:[%s2236_s5 + $0x140] sm:$0xff] %vm594_vm2, %v1732_v30 }
  0xd9   :  { %v459_v7 = vpop.f32.mrf.mxu0 }
  0xda   :  { %v1679_v9 = vadd.f32 %v1407_v11, %v459_v7  ;;  %v866_v7 = vadd.f32 %v865_v47, %v1536_v29 }
  0xdb   :  { %v499_v10 = vpop.f32.mrf.mxu1 }
  0xdc   :  { %v1690_v15 = vadd.f32 %v1407_v11, %v499_v10  ;;  %605 = vst.msk [vmem:[%s2236_s5 + $0x50] sm:$0xff] %vm594_vm2, %v1679_v9  ;;  %v868_v18 = vadd.f32 %v867_v39, %v866_v7  ;;  %v802_v29 = vmul.f32 %v1679_v9, %v1679_v9  ;;  %v678_v31 = vsel %vm594_vm2, %v1679_v9, 0.0 }
  0xdd   :  { %v536_v24 = vpop.f32.mrf.mxu2 }
  0xde   :  { %621 = vst.msk [vmem:[%s2236_s5 + $0xd0] sm:$0xff] %vm594_vm2, %v1690_v15  ;;  %v1748_v40 = vadd.f32 %v1407_v11, %v536_v24  ;;  %v875_v47 = vsel %vm594_vm2, %v802_v29, 0.0 }
  0xe0   :  { %636 = vst.msk [vmem:[%s2236_s5 + $0x148] sm:$0xff] %vm594_vm2, %v1748_v40 }
  0xe1   :  { %v461_v17 = vpop.f32.mrf.mxu0 }
  0xe2   :  { %v462_v19 = vadd.f32 %v1407_v11, %v461_v17  ;;  %v674_v17 = vsel %vm594_vm2, %v1615_v53, 0.0  ;;  %v871_v53 = vsel %vm594_vm2, %v800_v61, 0.0  ;;  %v571_v61 = vpop.f32.mrf.mxu3 }
  0xe3   :  { %v501_v20 = vpop.f32.mrf.mxu1 }
  0xe4   :  { %v1717_v22 = vadd.f32 %v1407_v11, %v501_v20  ;;  %606 = vst.msk [vmem:[%s2236_s5 + $0x58] sm:$0xff] %vm594_vm2, %v462_v19  ;;  %v673_v20 = vadd.f32 %v672_v60, %v671_v8  ;;  %v803_v38 = vmul.f32 %v462_v19, %v462_v19  ;;  %v680_v52 = vsel %vm594_vm2, %v462_v19, 0.0 }
  0xe5   :  { %v539_v57 = vpop.f32.mrf.mxu2  ;;  %v1832_v8 = vadd.f32 %v1407_v11, %v569_v25  ;;  %v1850_v25 = vadd.f32 %v1407_v11, %v571_v61 }
  0xe6   :  { %622 = vst.msk [vmem:[%s2236_s5 + $0xd8] sm:$0xff] %vm594_vm2, %v1717_v22  ;;  %v675_v24 = vadd.f32 %v674_v17, %v673_v20  ;;  %v1826_v60 = vadd.f32 %v1407_v11, %v539_v57  ;;  %v877_v19 = vsel %vm594_vm2, %v803_v38, 0.0 }
  0xe7   :  { %649 = vst.msk [vmem:[%s2236_s5 + $0x1b0] sm:$0xff] %vm594_vm2, %v1832_v8 }
  0xe8   :  { %v677_v46 = vadd.f32 %v676_v21, %v675_v24  ;;  %637 = vst.msk [vmem:[%s2236_s5 + $0x150] sm:$0xff] %vm594_vm2, %v1826_v60 }
  0xe9   :  { %v464_v5 = vpop.f32.mrf.mxu0  ;;  %650 = vst.msk [vmem:[%s2236_s5 + $0x1b8] sm:$0xff] %vm594_vm2, %v1850_v25 }
  0xea   :  { %v1729_v26 = vadd.f32 %v1407_v11, %v464_v5  ;;  %v870_v5 = vadd.f32 %v869_v13, %v868_v18 }
  0xeb   :  { %v504_v28 = vpop.f32.mrf.mxu1 }
  0xec   :  { %v1735_v33 = vadd.f32 %v1407_v11, %v504_v28  ;;  %607 = vst.msk [vmem:[%s2236_s5 + $0x60] sm:$0xff] %vm594_vm2, %v1729_v26  ;;  %v873_v28 = vsel %vm594_vm2, %v801_v45, 0.0  ;;  %v872_v44 = vadd.f32 %v871_v53, %v870_v5  ;;  %v682_v13 = vsel %vm594_vm2, %v1729_v26, 0.0 }
  0xed   :  { %v541_v51 = vpop.f32.mrf.mxu2 }
  0xee   :  { %623 = vst.msk [vmem:[%s2236_s5 + $0xe0] sm:$0xff] %vm594_vm2, %v1735_v33  ;;  %v874_v9 = vadd.f32 %v873_v28, %v872_v44  ;;  %v1842_v57 = vadd.f32 %v1407_v11, %v541_v51 }
  0xf0   :  { %v876_v45 = vadd.f32 %v875_v47, %v874_v9  ;;  %638 = vst.msk [vmem:[%s2236_s5 + $0x158] sm:$0xff] %vm594_vm2, %v1842_v57  ;;  %v809_v9 = vmul.f32 %v1437_v35, %v1437_v35 }
  0xf1   :  { %v466_v55 = vpop.f32.mrf.mxu0 }
  0xf2   :  { %v467_v63 = vadd.f32 %v1407_v11, %v466_v55  ;;  %v804_v55 = vmul.f32 %v1729_v26, %v1729_v26  ;;  %v878_v53 = vadd.f32 %v877_v19, %v876_v45 }
  0xf3   :  { %v506_v0 = vpop.f32.mrf.mxu1 }
  0xf4   :  { %v1796_v10 = vadd.f32 %v1407_v11, %v506_v0  ;;  %608 = vst.msk [vmem:[%s2236_s5 + $0x68] sm:$0xff] %vm594_vm2, %v467_v63  ;;  %v679_v0 = vadd.f32 %v678_v31, %v677_v46  ;;  %v805_v17 = vmul.f32 %v467_v63, %v467_v63  ;;  %v879_v26 = vsel %vm594_vm2, %v804_v55, 0.0 }
  0xf5   :  { %v684_v20 = vsel %vm594_vm2, %v467_v63, 0.0  ;;  %v880_v63 = vadd.f32 %v879_v26, %v878_v53  ;;  %v544_v38 = vpop.f32.mrf.mxu2  ;;  %v889_v53 = vsel %vm594_vm2, %v809_v9, 0.0 }
  0xf6   :  { %624 = vst.msk [vmem:[%s2236_s5 + $0xe8] sm:$0xff] %vm594_vm2, %v1796_v10  ;;  %v681_v18 = vadd.f32 %v680_v52, %v679_v0  ;;  %v881_v5 = vsel %vm594_vm2, %v805_v17, 0.0 }
  0xf7   :  { %v882_v51 = vadd.f32 %v881_v5, %v880_v63  ;;  %v811_v63 = vmul.f32 %v1480_v1, %v1480_v1 }
  0xf8   :  { %v683_v21 = vadd.f32 %v682_v13, %v681_v18  ;;  %v690_v13 = vsel %vm594_vm2, %v1422_v27, 0.0 }
  0xf9   :  { %v469_v32 = vpop.f32.mrf.mxu0 }
  0xfa   :  { %v470_v62 = vadd.f32 %v1407_v11, %v469_v32  ;;  %v685_v28 = vadd.f32 %v684_v20, %v683_v21  ;;  %v574_v32 = vpop.f32.mrf.mxu3  ;;  %v692_v20 = vsel %vm594_vm2, %v1437_v35, 0.0  ;;  %v694_v21 = vsel %vm594_vm2, %v1464_v54, 0.0 }
  0xfb   :  { %v509_v39 = vpop.f32.mrf.mxu1 }
  0xfc   :  { %v1829_v7 = vadd.f32 %v1407_v11, %v509_v39  ;;  %609 = vst.msk [vmem:[%s2236_s5 + $0x70] sm:$0xff] %vm594_vm2, %v470_v62  ;;  %v806_v29 = vmul.f32 %v470_v62, %v470_v62  ;;  %v686_v24 = vsel %vm594_vm2, %v470_v62, 0.0  ;;  %v808_v62 = vmul.f32 %v1422_v27, %v1422_v27 }
  0xfd   :  { %v687_v52 = vadd.f32 %v686_v24, %v685_v28  ;;  %v546_v27 = vpop.f32.mrf.mxu2  ;;  %v1909_v28 = vadd.f32 %v1407_v11, %v544_v38  ;;  %v812_v38 = vmul.f32 %v1516_v23, %v1516_v23 }
  0xfe   :  { %625 = vst.msk [vmem:[%s2236_s5 + $0xf0] sm:$0xff] %vm594_vm2, %v1829_v7  ;;  %v883_v44 = vsel %vm594_vm2, %v806_v29, 0.0  ;;  %v887_v26 = vsel %vm594_vm2, %v808_v62, 0.0  ;;  %v810_v29 = vmul.f32 %v1464_v54, %v1464_v54  ;;  %v1915_v35 = vadd.f32 %v1407_v11, %v546_v27 }
  0xff   :  { %v884_v0 = vadd.f32 %v883_v44, %v882_v51  ;;  %639 = vst.msk [vmem:[%s2236_s5 + $0x160] sm:$0xff] %vm594_vm2, %v1909_v28  ;;  %v816_v27 = vmul.f32 %v1626_v58, %v1626_v58 }
 0x100   :  { %v891_v51 = vsel %vm594_vm2, %v810_v29, 0.0  ;;  %640 = vst.msk [vmem:[%s2236_s5 + $0x168] sm:$0xff] %vm594_vm2, %v1915_v35  ;;  %v815_v29 = vmul.f32 %v1591_v48, %v1591_v48 }
 0x101   :  { %v471_v31 = vpop.f32.mrf.mxu0 }
 0x102   :  { %v472_v46 = vadd.f32 %v1407_v11, %v471_v31  ;;  %v1912_v31 = vadd.f32 %v1407_v11, %v574_v32  ;;  %v576_v44 = vpop.f32.mrf.mxu3 }
 0x103   :  { %v511_v47 = vpop.f32.mrf.mxu1  ;;  %v1918_v54 = vadd.f32 %v1407_v11, %v576_v44 }
 0x104   :  { %v1879_v55 = vadd.f32 %v1407_v11, %v511_v47  ;;  %610 = vst.msk [vmem:[%s2236_s5 + $0x78] sm:$0xff] %vm594_vm2, %v472_v46  ;;  %v688_v39 = vsel %vm594_vm2, %v472_v46, 0.0  ;;  %v807_v61 = vmul.f32 %v472_v46, %v472_v46 }
 0x105   :  { %v689_v19 = vadd.f32 %v688_v39, %v687_v52  ;;  %v696_v52 = vsel %vm594_vm2, %v1480_v1, 0.0  ;;  %651 = vst.msk [vmem:[%s2236_s5 + $0x1c0] sm:$0xff] %vm594_vm2, %v1912_v31  ;;  %v893_v39 = vsel %vm594_vm2, %v811_v63, 0.0  ;;  %v698_v1 = vsel %vm594_vm2, %v1516_v23, 0.0 }
 0x106   :  { %626 = vst.msk [vmem:[%s2236_s5 + $0xf8] sm:$0xff] %vm594_vm2, %v1879_v55  ;;  %v885_v17 = vsel %vm594_vm2, %v807_v61, 0.0  ;;  %v813_v61 = vmul.f32 %v1543_v34, %v1543_v34  ;;  %v700_v23 = vsel %vm594_vm2, %v1543_v34, 0.0  ;;  %v704_v34 = vsel %vm594_vm2, %v1591_v48, 0.0 }
 0x107   :  { %v691_v45 = vadd.f32 %v690_v13, %v689_v19  ;;  %v886_v18 = vadd.f32 %v885_v17, %v884_v0  ;;  %652 = vst.msk [vmem:[%s2236_s5 + $0x1c8] sm:$0xff] %vm594_vm2, %v1918_v54  ;;  %v895_v19 = vsel %vm594_vm2, %v812_v38, 0.0  ;;  %v814_v13 = vmul.f32 %v1570_v42, %v1570_v42 }
 0x108   :  { %v817_v63 = vmul.f32 %v1655_v2, %v1655_v2  ;;  %v903_v38 = vsel %vm594_vm2, %v816_v27, 0.0  ;;  %v708_v48 = vsel %vm594_vm2, %v1655_v2, 0.0  ;;  %v822_v27 = vmul.f32 %v1829_v7, %v1829_v7 }
 0x109   :  { %v693_v5 = vadd.f32 %v692_v20, %v691_v45  ;;  %v888_v24 = vadd.f32 %v887_v26, %v886_v18  ;;  %v549_v18 = vpop.f32.mrf.mxu2  ;;  %v897_v26 = vsel %vm594_vm2, %v813_v61, 0.0  ;;  %v702_v20 = vsel %vm594_vm2, %v1570_v42, 0.0 }
 0x10a   :  { %v901_v42 = vsel %vm594_vm2, %v815_v29, 0.0 }
 0x10b   :  { %v695_v46 = vadd.f32 %v694_v21, %v693_v5  ;;  %v890_v47 = vadd.f32 %v889_v53, %v888_v24  ;;  %v579_v53 = vpop.f32.mrf.mxu3  ;;  %v899_v24 = vsel %vm594_vm2, %v814_v13, 0.0 }
 0x10d   :  { %v697_v32 = vadd.f32 %v696_v52, %v695_v46  ;;  %v892_v62 = vadd.f32 %v891_v51, %v890_v47  ;;  %v706_v47 = vsel %vm594_vm2, %v1626_v58, 0.0  ;;  %v819_v58 = vmul.f32 %v1717_v22, %v1717_v22 }
 0x10f   :  { %v699_v9 = vadd.f32 %v698_v1, %v697_v32  ;;  %v894_v0 = vadd.f32 %v893_v39, %v892_v62  ;;  %v818_v32 = vmul.f32 %v1690_v15, %v1690_v15  ;;  %v905_v62 = vsel %vm594_vm2, %v817_v63, 0.0 }
 0x110   :  { %v710_v39 = vsel %vm594_vm2, %v1690_v15, 0.0 }
 0x111   :  { %v701_v17 = vadd.f32 %v700_v23, %v699_v9  ;;  %v896_v45 = vadd.f32 %v895_v19, %v894_v0  ;;  %v551_v9 = vpop.f32.mrf.mxu2  ;;  %v1981_v0 = vadd.f32 %v1407_v11, %v549_v18  ;;  %v1984_v19 = vadd.f32 %v1407_v11, %v579_v53 }
 0x112   :  { %v1987_v2 = vadd.f32 %v1407_v11, %v551_v9  ;;  %v820_v18 = vmul.f32 %v1735_v33, %v1735_v33  ;;  %v909_v53 = vsel %vm594_vm2, %v819_v58, 0.0 }
 0x113   :  { %v898_v21 = vadd.f32 %v897_v26, %v896_v45  ;;  %v703_v5 = vadd.f32 %v702_v20, %v701_v17  ;;  %v581_v23 = vpop.f32.mrf.mxu3  ;;  %v907_v45 = vsel %vm594_vm2, %v818_v32, 0.0  ;;  %v712_v26 = vsel %vm594_vm2, %v1717_v22, 0.0  ;;  %641 = vst.msk [vmem:[%s2236_s5 + $0x170] sm:$0xff] %vm594_vm2, %v1981_v0 }
 0x114   :  { %v1990_v15 = vadd.f32 %v1407_v11, %v581_v23  ;;  %653 = vst.msk [vmem:[%s2236_s5 + $0x1d0] sm:$0xff] %vm594_vm2, %v1984_v19  ;;  %v714_v22 = vsel %vm594_vm2, %v1735_v33, 0.0  ;;  %v716_v33 = vsel %vm594_vm2, %v1796_v10, 0.0  ;;  %v720_v32 = vsel %vm594_vm2, %v1879_v55, 0.0 }
 0x115   :  { %v705_v44 = vadd.f32 %v704_v34, %v703_v5  ;;  %v900_v46 = vadd.f32 %v899_v24, %v898_v21  ;;  %v821_v21 = vmul.f32 %v1796_v10, %v1796_v10  ;;  %642 = vst.msk [vmem:[%s2236_s5 + $0x178] sm:$0xff] %vm594_vm2, %v1987_v2  ;;  %v911_v34 = vsel %vm594_vm2, %v820_v18, 0.0 }
 0x116   :  { %654 = vst.msk [vmem:[%s2236_s5 + $0x1d8] sm:$0xff] %vm594_vm2, %v1990_v15  ;;  %v915_v10 = vsel %vm594_vm2, %v822_v27, 0.0  ;;  %v827_v18 = vmul.f32 %v1567_v41, %v1567_v41  ;;  %v829_v27 = vmul.f32 %v1623_v56, %v1623_v56 }
 0x117   :  { %v707_v51 = vadd.f32 %v706_v47, %v705_v44  ;;  %v902_v52 = vadd.f32 %v901_v42, %v900_v46  ;;  %v913_v46 = vsel %vm594_vm2, %v821_v21, 0.0  ;;  %v718_v42 = vsel %vm594_vm2, %v1829_v7, 0.0 }
 0x118   :  { %v823_v47 = vmul.f32 %v1879_v55, %v1879_v55  ;;  %v825_v7 = vmul.f32 %v1513_v4, %v1513_v4  ;;  %v826_v55 = vmul.f32 %v1556_v36, %v1556_v36 }
 0x119   :  { %v709_v1 = vadd.f32 %v708_v48, %v707_v51  ;;  %v904_v61 = vadd.f32 %v903_v38, %v902_v52  ;;  %v824_v48 = vmul.f32 %v1502_v14, %v1502_v14 }
 0x11a   :  { %v923_v21 = vsel %vm594_vm2, %v826_v55, 0.0 }
 0x11b   :  { %v711_v13 = vadd.f32 %v710_v39, %v709_v1  ;;  %v906_v17 = vadd.f32 %v905_v62, %v904_v61  ;;  %v584_v51 = vpop.f32.mrf.mxu3  ;;  %v722_v1 = vsel %vm594_vm2, %v1502_v14, 0.0  ;;  %v917_v61 = vsel %vm594_vm2, %v823_v47, 0.0 }
 0x11c   :  { %v919_v23 = vsel %vm594_vm2, %v824_v48, 0.0  ;;  %v726_v14 = vsel %vm594_vm2, %v1556_v36, 0.0  ;;  %v828_v36 = vmul.f32 %v1604_v49, %v1604_v49  ;;  %v830_v47 = vmul.f32 %v1668_v3, %v1668_v3 }
 0x11d   :  { %v713_v20 = vadd.f32 %v712_v26, %v711_v13  ;;  %v908_v29 = vadd.f32 %v907_v45, %v906_v17  ;;  %v724_v13 = vsel %vm594_vm2, %v1513_v4, 0.0  ;;  %v921_v26 = vsel %vm594_vm2, %v825_v7, 0.0 }
 0x11e   :  { %v831_v48 = vmul.f32 %v1687_v12, %v1687_v12 }
 0x11f   :  { %v715_v5 = vadd.f32 %v714_v22, %v713_v20  ;;  %v910_v24 = vadd.f32 %v909_v53, %v908_v29  ;;  %v2053_v20 = vadd.f32 %v1407_v11, %v584_v51 }
 0x121   :  { %v912_v63 = vadd.f32 %v911_v34, %v910_v24  ;;  %v717_v44 = vadd.f32 %v716_v33, %v715_v5  ;;  %v728_v5 = vsel %vm594_vm2, %v1567_v41, 0.0  ;;  %655 = vst.msk [vmem:[%s2236_s5 + $0x1e0] sm:$0xff] %vm594_vm2, %v2053_v20  ;;  %v925_v33 = vsel %vm594_vm2, %v827_v18, 0.0 }
 0x122   :  { %v730_v41 = vsel %vm594_vm2, %v1604_v49, 0.0  ;;  %v734_v49 = vsel %vm594_vm2, %v1668_v3, 0.0  ;;  %v738_v3 = vsel %vm594_vm2, %v1732_v30, 0.0  ;;  %v835_v18 = vmul.f32 %v1842_v57, %v1842_v57 }
 0x123   :  { %v914_v52 = vadd.f32 %v913_v46, %v912_v63  ;;  %v719_v38 = vadd.f32 %v718_v42, %v717_v44  ;;  %v586_v29 = vpop.f32.mrf.mxu3  ;;  %v927_v46 = vsel %vm594_vm2, %v828_v36, 0.0  ;;  %v732_v42 = vsel %vm594_vm2, %v1623_v56, 0.0 }
 0x124   :  { %v2056_v4 = vadd.f32 %v1407_v11, %v586_v29  ;;  %v736_v56 = vsel %vm594_vm2, %v1687_v12, 0.0  ;;  %v740_v12 = vsel %vm594_vm2, %v1748_v40, 0.0  ;;  %v744_v36 = vsel %vm594_vm2, %v1842_v57, 0.0 }
 0x125   :  { %v916_v62 = vadd.f32 %v915_v10, %v914_v52  ;;  %v721_v39 = vadd.f32 %v720_v32, %v719_v38  ;;  %v929_v38 = vsel %vm594_vm2, %v829_v27, 0.0  ;;  %v746_v57 = vsel %vm594_vm2, %v1909_v28, 0.0 }
 0x126   :  { %656 = vst.msk [vmem:[%s2236_s5 + $0x1e8] sm:$0xff] %vm594_vm2, %v2056_v4 }
 0x127   :  { %v723_v9 = vadd.f32 %v722_v1, %v721_v39  ;;  %v918_v58 = vadd.f32 %v917_v61, %v916_v62  ;;  %v931_v39 = vsel %vm594_vm2, %v830_v47, 0.0  ;;  %v832_v1 = vmul.f32 %v1732_v30, %v1732_v30 }
 0x128   :  { %v742_v30 = vsel %vm594_vm2, %v1826_v60, 0.0 }
 0x129   :  { %v725_v17 = vadd.f32 %v724_v13, %v723_v9  ;;  %v920_v45 = vadd.f32 %v919_v23, %v918_v58  ;;  %v933_v9 = vsel %vm594_vm2, %v831_v48, 0.0  ;;  %v833_v58 = vmul.f32 %v1748_v40, %v1748_v40 }
 0x12a   :  { %v935_v55 = vsel %vm594_vm2, %v832_v1, 0.0  ;;  %v840_v48 = vmul.f32 %v1607_v50, %v1607_v50 }
 0x12b   :  { %v727_v53 = vadd.f32 %v726_v14, %v725_v17  ;;  %v922_v22 = vadd.f32 %v921_v26, %v920_v45  ;;  %v589_v10 = vpop.f32.mrf.mxu3  ;;  %v834_v17 = vmul.f32 %v1826_v60, %v1826_v60  ;;  %v937_v14 = vsel %vm594_vm2, %v833_v58, 0.0 }
 0x12c   :  { %v2109_v29 = vadd.f32 %v1407_v11, %v589_v10  ;;  %v836_v60 = vmul.f32 %v1909_v28, %v1909_v28  ;;  %v750_v28 = vsel %vm594_vm2, %v1981_v0, 0.0  ;;  %v752_v10 = vsel %vm594_vm2, %v1987_v2, 0.0 }
 0x12d   :  { %v729_v24 = vadd.f32 %v728_v5, %v727_v53  ;;  %v924_v34 = vadd.f32 %v923_v21, %v922_v22  ;;  %v939_v5 = vsel %vm594_vm2, %v834_v17, 0.0 }
 0x12e   :  { %657 = vst.msk [vmem:[%s2236_s5 + $0x1f0] sm:$0xff] %vm594_vm2, %v2109_v29 }
 0x12f   :  { %v731_v63 = vadd.f32 %v730_v41, %v729_v24  ;;  %v926_v44 = vadd.f32 %v925_v33, %v924_v34  ;;  %v837_v33 = vmul.f32 %v1915_v35, %v1915_v35 }
 0x131   :  { %v928_v51 = vadd.f32 %v927_v46, %v926_v44  ;;  %v733_v52 = vadd.f32 %v732_v42, %v731_v63  ;;  %v943_v63 = vsel %vm594_vm2, %v836_v60, 0.0  ;;  %v748_v44 = vsel %vm594_vm2, %v1915_v35, 0.0 }
 0x132   :  { %v838_v46 = vmul.f32 %v1981_v0, %v1981_v0  ;;  %v841_v0 = vmul.f32 %v1629_v59, %v1629_v59 }
 0x133   :  { %v735_v32 = vadd.f32 %v734_v49, %v733_v52  ;;  %v930_v62 = vadd.f32 %v929_v38, %v928_v51  ;;  %v591_v53 = vpop.f32.mrf.mxu3  ;;  %v945_v51 = vsel %vm594_vm2, %v837_v33, 0.0  ;;  %v839_v52 = vmul.f32 %v1987_v2, %v1987_v2 }
 0x134   :  { %v2112_v40 = vadd.f32 %v1407_v11, %v591_v53  ;;  %v941_v11 = vsel %vm594_vm2, %v835_v18, 0.0  ;;  %v947_v35 = vsel %vm594_vm2, %v838_v46, 0.0  ;;  %v842_v2 = vmul.f32 %v1671_v6, %v1671_v6 }
 0x135   :  { %v737_v7 = vadd.f32 %v736_v56, %v735_v32  ;;  %v932_v61 = vadd.f32 %v931_v39, %v930_v62  ;;  %v754_v39 = vsel %vm594_vm2, %v1607_v50, 0.0  ;;  %v949_v56 = vsel %vm594_vm2, %v839_v52, 0.0 }
 0x136   :  { %658 = vst.msk [vmem:[%s2236_s5 + $0x1f8] sm:$0xff] %vm594_vm2, %v2112_v40  ;;  %v758_v50 = vsel %vm594_vm2, %v1671_v6, 0.0  ;;  %v955_v17 = vsel %vm594_vm2, %v842_v2, 0.0  ;;  %v762_v6 = vsel %vm594_vm2, %v1738_v37, 0.0  ;;  %v845_v18 = vmul.f32 %v1756_v43, %v1756_v43 }
 0x137   :  { %v739_v23 = vadd.f32 %v738_v3, %v737_v7  ;;  %v934_v13 = vadd.f32 %v933_v9, %v932_v61  ;;  %v951_v61 = vsel %vm594_vm2, %v840_v48, 0.0  ;;  %v756_v9 = vsel %vm594_vm2, %v1629_v59, 0.0 }
 0x138   :  { %v760_v59 = vsel %vm594_vm2, %v1693_v16, 0.0  ;;  %v849_v46 = vmul.f32 %v1918_v54, %v1918_v54  ;;  %v851_v48 = vmul.f32 %v1990_v15, %v1990_v15  ;;  %v854_v2 = vmul.f32 %v2109_v29, %v2109_v29 }
 0x139   :  { %v741_v45 = vadd.f32 %v740_v12, %v739_v23  ;;  %v936_v26 = vadd.f32 %v935_v55, %v934_v13  ;;  %v953_v23 = vsel %vm594_vm2, %v841_v0, 0.0  ;;  %v843_v13 = vmul.f32 %v1693_v16, %v1693_v16 }
 0x13a   :  { %v764_v16 = vsel %vm594_vm2, %v1756_v43, 0.0  ;;  %v768_v43 = vsel %vm594_vm2, %v1850_v25, 0.0 }
 0x13b   :  { %v743_v22 = vadd.f32 %v742_v30, %v741_v45  ;;  %v938_v21 = vadd.f32 %v937_v14, %v936_v26  ;;  %v844_v45 = vmul.f32 %v1738_v37, %v1738_v37  ;;  %v957_v30 = vsel %vm594_vm2, %v843_v13, 0.0 }
 0x13c   :  { %v766_v37 = vsel %vm594_vm2, %v1832_v8, 0.0 }
 0x13d   :  { %v745_v24 = vadd.f32 %v744_v36, %v743_v22  ;;  %v940_v34 = vadd.f32 %v939_v5, %v938_v21  ;;  %v959_v21 = vsel %vm594_vm2, %v844_v45, 0.0  ;;  %v846_v5 = vmul.f32 %v1832_v8, %v1832_v8 }
 0x13e   :  { %v770_v8 = vsel %vm594_vm2, %v1912_v31, 0.0 }
 0x13f   :  { %v942_v41 = vadd.f32 %v941_v11, %v940_v34  ;;  %v747_v27 = vadd.f32 %v746_v57, %v745_v24  ;;  %v961_v24 = vsel %vm594_vm2, %v845_v18, 0.0  ;;  %v847_v34 = vmul.f32 %v1850_v25, %v1850_v25 }
 0x140   :  { %v963_v33 = vsel %vm594_vm2, %v846_v5, 0.0  ;;  %v772_v25 = vsel %vm594_vm2, %v1918_v54, 0.0  ;;  %v776_v54 = vsel %vm594_vm2, %v1990_v15, 0.0  ;;  %v780_v15 = vsel %vm594_vm2, %v2056_v4, 0.0 }
 0x141   :  { %v944_v42 = vadd.f32 %v943_v63, %v942_v41  ;;  %v749_v47 = vadd.f32 %v748_v44, %v747_v27  ;;  %v848_v41 = vmul.f32 %v1912_v31, %v1912_v31  ;;  %v965_v44 = vsel %vm594_vm2, %v847_v34, 0.0 }
 0x142   :  { %v774_v31 = vsel %vm594_vm2, %v1984_v19, 0.0 }
 0x143   :  { %v946_v38 = vadd.f32 %v945_v51, %v944_v42  ;;  %v751_v49 = vadd.f32 %v750_v28, %v749_v47  ;;  %v967_v51 = vsel %vm594_vm2, %v848_v41, 0.0  ;;  %v850_v28 = vmul.f32 %v1984_v19, %v1984_v19 }
 0x144   :  { %v778_v19 = vsel %vm594_vm2, %v2053_v20, 0.0 }
 0x145   :  { %v948_v32 = vadd.f32 %v947_v35, %v946_v38  ;;  %v753_v62 = vadd.f32 %v752_v10, %v751_v49  ;;  %v969_v49 = vsel %vm594_vm2, %v849_v46, 0.0 }
 0x147   :  { %v755_v1 = vadd.f32 %v754_v39, %v753_v62  ;;  %v950_v7 = vadd.f32 %v949_v56, %v948_v32  ;;  %v971_v32 = vsel %vm594_vm2, %v850_v28, 0.0  ;;  %v852_v62 = vmul.f32 %v2053_v20, %v2053_v20 }
 0x148   :  { %v973_v56 = vsel %vm594_vm2, %v851_v48, 0.0  ;;  %v782_v20 = vsel %vm594_vm2, %v2109_v29, 0.0 }
 0x149   :  { %v757_v3 = vadd.f32 %v756_v9, %v755_v1  ;;  %v952_v58 = vadd.f32 %v951_v61, %v950_v7  ;;  %v853_v1 = vmul.f32 %v2056_v4, %v2056_v4  ;;  %v975_v9 = vsel %vm594_vm2, %v852_v62, 0.0 }
 0x14a   :  { %v784_v4 = vsel %vm594_vm2, %v2112_v40, 0.0 }
 0x14b   :  { %v759_v55 = vadd.f32 %v758_v50, %v757_v3  ;;  %v954_v12 = vadd.f32 %v953_v23, %v952_v58  ;;  %v977_v23 = vsel %vm594_vm2, %v853_v1, 0.0  ;;  %v855_v50 = vmul.f32 %v2112_v40, %v2112_v40 }
 0x14d   :  { %v761_v26 = vadd.f32 %v760_v59, %v759_v55  ;;  %v956_v14 = vadd.f32 %v955_v17, %v954_v12  ;;  %v979_v12 = vsel %vm594_vm2, %v854_v2, 0.0  ;;  %v981_v45 = vsel %vm594_vm2, %v855_v50, 0.0 }
 0x14f   :  { %v763_v53 = vadd.f32 %v762_v6, %v761_v26  ;;  %v958_v22 = vadd.f32 %v957_v30, %v956_v14 }
 0x151   :  { %v960_v36 = vadd.f32 %v959_v21, %v958_v22  ;;  %v765_v60 = vadd.f32 %v764_v16, %v763_v53 }
 0x153   :  { %v767_v11 = vadd.f32 %v766_v37, %v765_v60  ;;  %v962_v57 = vadd.f32 %v961_v24, %v960_v36 }
 0x155   :  { %v769_v27 = vadd.f32 %v768_v43, %v767_v11  ;;  %v964_v63 = vadd.f32 %v963_v33, %v962_v57 }
 0x157   :  { %v771_v42 = vadd.f32 %v770_v8, %v769_v27  ;;  %v966_v47 = vadd.f32 %v965_v44, %v964_v63 }
 0x159   :  { %v773_v52 = vadd.f32 %v772_v25, %v771_v42  ;;  %v968_v38 = vadd.f32 %v967_v51, %v966_v47 }
 0x15b   :  { %v775_v35 = vadd.f32 %v774_v31, %v773_v52  ;;  %v970_v10 = vadd.f32 %v969_v49, %v968_v38 }
 0x15d   :  { %v777_v39 = vadd.f32 %v776_v54, %v775_v35  ;;  %v972_v0 = vadd.f32 %v971_v32, %v970_v10 }
 0x15f   :  { %v974_v7 = vadd.f32 %v973_v56, %v972_v0  ;;  %v779_v61 = vadd.f32 %v778_v19, %v777_v39 }
 0x161   :  { %v976_v3 = vadd.f32 %v975_v9, %v974_v7  ;;  %v781_v58 = vadd.f32 %v780_v15, %v779_v61 }
 0x163   :  { %v978_v13 = vadd.f32 %v977_v23, %v976_v3  ;;  %v783_v55 = vadd.f32 %v782_v20, %v781_v58 }
 0x165   :  { %v980_v17 = vadd.f32 %v979_v12, %v978_v13  ;;  %v785_v59 = vadd.f32 %v784_v4, %v783_v55 }
 0x167   :  { %v786_v26 = vrot.slane %v785_v59, 4  ;;  %v982_v14 = vadd.f32 %v981_v45, %v980_v17 }
 0x169   :  { %v787_v30 = vadd.f32 %v786_v26, %v785_v59  ;;  %v983_v6 = vrot.slane %v982_v14, 4 }
 0x16b   :  { %v788_v18 = vrot.slane %v787_v30, 2  ;;  %v984_v29 = vadd.f32 %v983_v6, %v982_v14 }
 0x16d   :  { %v789_v53 = vadd.f32 %v788_v18, %v787_v30  ;;  %v985_v22 = vrot.slane %v984_v29, 2 }
 0x16f   :  { %v790_v21 = vrot.slane %v789_v53, 1  ;;  %v986_v16 = vadd.f32 %v985_v22, %v984_v29 }
 0x171   :  { %v987_v5 = vrot.slane %v986_v16, 1  ;;  %v791_v36 = vadd.f32 %v790_v21, %v789_v53 }
 0x173   :  { %v988_v60 = vadd.f32 %v987_v5, %v986_v16 }
 0x175   :  { %v990_v40 = vsel %vm989_vm3, %v791_v36, %v988_v60 }
 0x176   :  { %992 = vst.msk [vmem:[%s2237_s6] sm:$0x3] %vm991_vm4, %v990_v40 }

// kernel: dense_layer_forward.3
= control target key start
LH: loop header
LB: loop body
LE: loop exit
PB: predicated region body
PF: predicated region fallthrough
CT: control target
= control target key end

     0   :  { %s2094_s18 = smov 0   ;;  %s2482_s0 = inlined_call_operand.vmem [shape: f32[2,16,512], index: 0, kind: input, shape index: {}]   ;;  %s2483_s1 = inlined_call_operand.vmem [shape: f32[1,512], index: 1, kind: input, shape index: {}]   ;;  %s2484_s2 = inlined_call_operand.vmem [shape: f32[1,512], index: 2, kind: input, shape index: {}]   ;;  %s2485_s3 = inlined_call_operand.vmem [shape: bf16[3,512,128], index: 3, kind: input, shape index: {}]   ;;  %s2486_s4 = inlined_call_operand.vmem [shape: f32[1,128], index: 4, kind: input, shape index: {}]   ;;  %s2487_s5 = inlined_call_operand.vmem [shape: f32[2,16,128], index: 5, kind: output, shape index: {}]  }
   0x1 LB: > { %s1426_s19 = sadd.s32 4294967295, %s2062_s18   ;;  %p1430_p0 = scmp.ge.s32.totalorder %s2062_s18, 1  ;;  %s2062_s18 = sphi %s2094_s18, %s15_s18  }
   0x2   : > { %p187_p1 = scmp.lt.s32.totalorder %s2062_s18, 3 }
   0x4   : > { %p188_p2 = pnand %p1430_p0, %p187_p1 }
   0x5   : > { %p215_p3 = scmp.lt.s32.totalorder (!%p188_p2), %s1426_s19, 1 }
   0x6   : > { %191 = sbr.rel (%p188_p2) target bundleno = 258 (0x102), region = 40 }
   0xb   : > { %v1990_v0 = vld [vmem:[%s2485_s3 + $0x138] sm:$0xff]  ;;  %v1989_v4 = vld [vmem:[%s2485_s3 + $0x130] sm:$0xff]  ;;  %v1988_v8 = vld [vmem:[%s2485_s3 + $0x128] sm:$0xff]  ;;  %s2491_s19 = smov (!%p215_p3, %s1426_s19), 1  ;;  %vm334_vm0 = vcmask 1040384   ;;  %vm1096_vm4 = vcmask 1046528  }
   0xc   : > { %v1998_v1 = vld [vmem:[%s2485_s3 + $0x178] sm:$0xff]  ;;  %719 = vmatpush.bf16.msra.mxu0 %v1990_v0  ;;  %v1997_v5 = vld [vmem:[%s2485_s3 + $0x170] sm:$0xff]  ;;  %v1996_v9 = vld [vmem:[%s2485_s3 + $0x168] sm:$0xff]  ;;  %s1949_s25 = sshll.u32 %s2491_s19, 6  ;;  %vm335_vm1 = vsmask.f32 256 }
   0xd   : > { %v2006_v2 = vld [vmem:[%s2485_s3 + $0x1b8] sm:$0xff]  ;;  %733 = vmatpush.bf16.msra.mxu1 %v1998_v1  ;;  %v2005_v6 = vld [vmem:[%s2485_s3 + $0x1b0] sm:$0xff]  ;;  %v2004_v10 = vld [vmem:[%s2485_s3 + $0x1a8] sm:$0xff]  ;;  %s219_s7 = scalar_lea.vmem %s2482_s0, %s1949_s25  ;;  %vm474_vm3 = vsmask.f32 7424  ;;  %s1950_s11 = sshll.u32 %s2491_s19, 4 }
   0xe   : > { %v2014_v3 = vld [vmem:[%s2485_s3 + $0x1f8] sm:$0xff]  ;;  %747 = vmatpush.bf16.msra.mxu2 %v2006_v2  ;;  %v2013_v7 = vld [vmem:[%s2485_s3 + $0x1f0] sm:$0xff]  ;;  %v2012_v11 = vld [vmem:[%s2485_s3 + $0x1e8] sm:$0xff]  ;;  %s224_s16 = scalar_lea.vmem %s2487_s5, %s1950_s11 }
   0xf   : > { %761 = vmatpush.bf16.msra.mxu3 %v2014_v3  ;;  %v1987_v12 = vld [vmem:[%s2485_s3 + $0x120] sm:$0xff]  ;;  %v1986_v16 = vld [vmem:[%s2485_s3 + $0x118] sm:$0xff]  ;;  %v1985_v20 = vld [vmem:[%s2485_s3 + $0x110] sm:$0xff] }
  0x10   : > { %720 = vmatpush.bf16.msra.mxu0 %v1989_v4  ;;  %v1995_v13 = vld [vmem:[%s2485_s3 + $0x160] sm:$0xff]  ;;  %v1994_v17 = vld [vmem:[%s2485_s3 + $0x158] sm:$0xff]  ;;  %v1993_v21 = vld [vmem:[%s2485_s3 + $0x150] sm:$0xff] }
  0x11   : > { %734 = vmatpush.bf16.msra.mxu1 %v1997_v5  ;;  %v2003_v14 = vld [vmem:[%s2485_s3 + $0x1a0] sm:$0xff]  ;;  %v2002_v18 = vld [vmem:[%s2485_s3 + $0x198] sm:$0xff]  ;;  %v227_v23 = vld [vmem:[%s219_s7 + $0x8] sm:$0xff] }
  0x12   : > { %748 = vmatpush.bf16.msra.mxu2 %v2005_v6  ;;  %v2011_v15 = vld [vmem:[%s2485_s3 + $0x1e0] sm:$0xff]  ;;  %v2010_v19 = vld [vmem:[%s2485_s3 + $0x1d8] sm:$0xff]  ;;  %v2001_v25 = vld [vmem:[%s2485_s3 + $0x190] sm:$0xff] }
  0x13   : > { %762 = vmatpush.bf16.msra.mxu3 %v2013_v7  ;;  %v226_v22 = vld [vmem:[%s219_s7] sm:$0xff]  ;;  %v2009_v26 = vld [vmem:[%s2485_s3 + $0x1d0] sm:$0xff]  ;;  %v231_v27 = vld [vmem:[%s219_s7 + $0x28] sm:$0xff] }
  0x14   : > { %721 = vmatpush.bf16.msra.mxu0 %v1988_v8  ;;  %v230_v24 = vld [vmem:[%s219_s7 + $0x20] sm:$0xff]  ;;  %v228_v34 = vld [vmem:[%s219_s7 + $0x10] sm:$0xff]  ;;  %v229_v35 = vld [vmem:[%s219_s7 + $0x18] sm:$0xff] }
  0x15   : > { %735 = vmatpush.bf16.msra.mxu1 %v1996_v9  ;;  %v234_v28 = vld [vmem:[%s2483_s1] sm:$0xf]  ;;  %v232_v36 = vld [vmem:[%s219_s7 + $0x30] sm:$0xff]  ;;  %v233_v37 = vld [vmem:[%s219_s7 + $0x38] sm:$0xff] }
  0x16   : > { %749 = vmatpush.bf16.msra.mxu2 %v2004_v10  ;;  %v252_v29 = vld [vmem:[%s2484_s2] sm:$0xf]  ;;  %v236_v30 = vperm.slane %v234_v28, 0  ;;  %v237_v31 = vperm.slane %v234_v28, 1  ;;  %v238_v38 = vperm.slane %v234_v28, 2  ;;  %v239_v39 = vperm.slane %v234_v28, 3  ;;  %vm2242_vm2 = vmand %vm334_vm0, %vm335_vm1 }
  0x17   : > { %763 = vmatpush.bf16.msra.mxu3 %v2012_v11  ;;  %v254_v32 = vperm.slane %v252_v29, 0  ;;  %v255_v33 = vperm.slane %v252_v29, 1  ;;  %v256_v40 = vperm.slane %v252_v29, 2  ;;  %v257_v41 = vperm.slane %v252_v29, 3  ;;  %v1984_v50 = vld [vmem:[%s2485_s3 + $0x108] sm:$0xff]  ;;  %v1983_v4 = vld [vmem:[%s2485_s3 + $0x100] sm:$0xff] }
  0x18   : > { %722 = vmatpush.bf16.msra.mxu0 %v1987_v12  ;;  %v244_v42 = vmul.f32 %v236_v30, %v226_v22  ;;  %v245_v43 = vmul.f32 %v237_v31, %v227_v23  ;;  %v248_v44 = vmul.f32 %v236_v30, %v230_v24  ;;  %v249_v45 = vmul.f32 %v237_v31, %v231_v27  ;;  %v1992_v51 = vld [vmem:[%s2485_s3 + $0x148] sm:$0xff]  ;;  %v1991_v5 = vld [vmem:[%s2485_s3 + $0x140] sm:$0xff]  ;;  %v1957_v28 = vld [vmem:[%s2485_s3 + $0x30] sm:$0xff] }
  0x19   : > { %736 = vmatpush.bf16.msra.mxu1 %v1995_v13  ;;  %v246_v46 = vmul.f32 %v238_v38, %v228_v34  ;;  %v247_v47 = vmul.f32 %v239_v39, %v229_v35  ;;  %v250_v48 = vmul.f32 %v238_v38, %v232_v36  ;;  %v251_v49 = vmul.f32 %v239_v39, %v233_v37  ;;  %v2000_v55 = vld [vmem:[%s2485_s3 + $0x188] sm:$0xff]  ;;  %v1999_v8 = vld [vmem:[%s2485_s3 + $0x180] sm:$0xff]  ;;  %v1958_v13 = vld [vmem:[%s2485_s3 + $0x38] sm:$0xff] }
  0x1a   : > { %750 = vmatpush.bf16.msra.mxu2 %v2003_v14  ;;  %v262_v52 = vadd.f32 %v254_v32, %v244_v42  ;;  %v263_v53 = vadd.f32 %v255_v33, %v245_v43  ;;  %v266_v54 = vadd.f32 %v254_v32, %v248_v44  ;;  %v2008_v56 = vld [vmem:[%s2485_s3 + $0x1c8] sm:$0xff]  ;;  %v267_v57 = vadd.f32 %v255_v33, %v249_v45  ;;  %v2007_v9 = vld [vmem:[%s2485_s3 + $0x1c0] sm:$0xff]  ;;  %v1966_v14 = vld [vmem:[%s2485_s3 + $0x78] sm:$0xff] }
  0x1b   : > { %764 = vmatpush.bf16.msra.mxu3 %v2011_v15  ;;  %v264_v58 = vadd.f32 %v256_v40, %v246_v46  ;;  %v265_v59 = vadd.f32 %v257_v41, %v247_v47  ;;  %v268_v63 = vadd.f32 %v256_v40, %v250_v48  ;;  %v269_v1 = vadd.f32 %v257_v41, %v251_v49  ;;  %v1965_v29 = vld [vmem:[%s2485_s3 + $0x70] sm:$0xff]  ;;  %v1956_v42 = vld [vmem:[%s2485_s3 + $0x28] sm:$0xff]  ;;  %v1959_v44 = vld [vmem:[%s2485_s3 + $0x40] sm:$0xff] }
  0x1c   : > { %723 = vmatpush.bf16.msra.mxu0 %v1986_v16  ;;  %v270_v60 = vmax.f32 %v262_v52, 0.0  ;;  %v271_v61 = vmax.f32 %v263_v53, 0.0  ;;  %v274_v62 = vmax.f32 %v266_v54, 0.0  ;;  %v275_v0 = vmax.f32 %v267_v57, 0.0  ;;  %v1973_v30 = vld [vmem:[%s2485_s3 + $0xb0] sm:$0xff]  ;;  %v1964_v43 = vld [vmem:[%s2485_s3 + $0x68] sm:$0xff] }
  0x1d   : > { %737 = vmatpush.bf16.msra.mxu1 %v1994_v17  ;;  %v272_v2 = vmax.f32 %v264_v58, 0.0  ;;  %v273_v3 = vmax.f32 %v265_v59, 0.0  ;;  %v276_v7 = vmax.f32 %v268_v63, 0.0  ;;  %v277_v11 = vmax.f32 %v269_v1, 0.0  ;;  %v1974_v17 = vld [vmem:[%s2485_s3 + $0xb8] sm:$0xff]  ;;  %v1981_v31 = vld [vmem:[%s2485_s3 + $0xf0] sm:$0xff] }
  0x1e   : > { %751 = vmatpush.bf16.msra.mxu2 %v2002_v18  ;;  %v278_v6 = vpack.c.bf16 %v271_v61, %v270_v60  ;;  %v280_v10 = vpack.c.bf16 %v275_v0, %v274_v62  ;;  %v1982_v18 = vld [vmem:[%s2485_s3 + $0xf8] sm:$0xff]  ;;  %v1972_v46 = vld [vmem:[%s2485_s3 + $0xa8] sm:$0xff]  ;;  %v1955_v59 = vld [vmem:[%s2485_s3 + $0x20] sm:$0xff] }
  0x1f   : > { %765 = vmatpush.bf16.msra.mxu3 %v2010_v19  ;;  %v279_v12 = vpack.c.bf16 %v273_v3, %v272_v2  ;;  %v1980_v47 = vld [vmem:[%s2485_s3 + $0xe8] sm:$0xff]  ;;  %v1963_v60 = vld [vmem:[%s2485_s3 + $0x60] sm:$0xff] }
  0x20   : > { %724 = vmatpush.bf16.msra.mxu0 %v1985_v20  ;;  %v286_v15 = vunpack.c.l.b16 %v278_v6  ;;  %v287_v16 = vunpack.c.h.b16 %v278_v6  ;;  %v290_v19 = vunpack.c.l.b16 %v280_v10  ;;  %v281_v20 = vpack.c.bf16 %v277_v11, %v276_v7  ;;  %v1971_v1 = vld [vmem:[%s2485_s3 + $0xa0] sm:$0xff] }
  0x21   : > { %738 = vmatpush.bf16.msra.mxu1 %v1993_v21  ;;  %v288_v21 = vunpack.c.l.b16 %v279_v12  ;;  %v291_v22 = vunpack.c.h.b16 %v280_v10  ;;  %v289_v23 = vunpack.c.h.b16 %v279_v12  ;;  %v1979_v2 = vld [vmem:[%s2485_s3 + $0xe0] sm:$0xff] }
  0x22   : > { %752 = vmatpush.bf16.msra.mxu2 %v2001_v25  ;;  %v294_v24 = vpack.c.b16 %v290_v19, %v286_v15  ;;  %v292_v25 = vunpack.c.l.b16 %v281_v20  ;;  %v293_v27 = vunpack.c.h.b16 %v281_v20  ;;  %v1978_v19 = vld [vmem:[%s2485_s3 + $0xd8] sm:$0xff] }
  0x23   : > { %766 = vmatpush.bf16.msra.mxu3 %v2009_v26  ;;  %v295_v26 = vpack.c.b16 %v291_v22, %v287_v16  ;;  %v1954_v16 = vld [vmem:[%s2485_s3 + $0x18] sm:$0xff] }
  0x24   : > { %725 = vmatpush.bf16.msra.mxu0 %v1984_v50  ;;  %v299_v32 = vshrl.u32 %v294_v24, 16  ;;  %v302_v33 = vshll.u32 %v294_v24, 16  ;;  %v296_v34 = vpack.c.b16 %v292_v25, %v288_v21  ;;  %v297_v37 = vpack.c.b16 %v293_v27, %v289_v23 }
  0x25   : > { %739 = vmatpush.bf16.msra.mxu1 %v1992_v51  ;;  %v306_v35 = vshrl.u32 %v295_v26, 16  ;;  %v309_v36 = vshll.u32 %v295_v26, 16  ;;  %v1970_v26 = vld [vmem:[%s2485_s3 + $0x98] sm:$0xff] }
  0x26   : > { %753 = vmatpush.bf16.msra.mxu2 %v2000_v55  ;;  %v301_v38 = vrot.slane %v299_v32, 7  ;;  %v313_v39 = vshrl.u32 %v296_v34, 16  ;;  %v316_v40 = vshll.u32 %v296_v34, 16  ;;  %v320_v45 = vshrl.u32 %v297_v37, 16  ;;  %v1961_v34 = vld [vmem:[%s2485_s3 + $0x50] sm:$0xff] }
  0x27   : > { %767 = vmatpush.bf16.msra.mxu3 %v2008_v56  ;;  %v308_v41 = vrot.slane %v306_v35, 7  ;;  %v323_v54 = vshll.u32 %v297_v37, 16  ;;  %v1977_v37 = vld [vmem:[%s2485_s3 + $0xd0] sm:$0xff] }
  0x28   : > { %726 = vmatpush.bf16.msra.mxu0 %v1983_v4  ;;  %v304_v48 = vor.u32 %v302_v33, %v301_v38  ;;  %v2254_v49 = vsel %vm2242_vm2, %v301_v38, 0  ;;  %v315_v50 = vrot.slane %v313_v39, 7  ;;  %v322_v53 = vrot.slane %v320_v45, 7  ;;  %v1953_v33 = vld [vmem:[%s2485_s3 + $0x10] sm:$0xff]  ;;  %v1952_v39 = vld [vmem:[%s2485_s3 + $0x8] sm:$0xff]  ;;  %v2022_v45 = vld [vmem:[%s2485_s3 + $0x238] sm:$0xff] }
  0x29   : > { %740 = vmatpush.bf16.msra.mxu1 %v1991_v5  ;;  %v311_v51 = vor.u32 %v309_v36, %v308_v41  ;;  %v483_v52 = vshll.u32 %v2254_v49, 16  ;;  %v2280_v0 = vsel %vm2242_vm2, %v308_v41, 0  ;;  %v1969_v36 = vld [vmem:[%s2485_s3 + $0x90] sm:$0xff]  ;;  %v1968_v41 = vld [vmem:[%s2485_s3 + $0x88] sm:$0xff] }
  0x2a   : > { %754 = vmatpush.bf16.msra.mxu2 %v1999_v8  ;;  %v2259_v55 = vsel %vm2242_vm2, 0, %v304_v48  ;;  %v318_v56 = vor.u32 %v316_v40, %v315_v50  ;;  %v2263_v57 = vsel %vm2242_vm2, %v315_v50, 0  ;;  %v495_v11 = vshll.u32 %v2280_v0, 16  ;;  %v1960_v40 = vld [vmem:[%s2485_s3 + $0x48] sm:$0xff]  ;;  %v1975_v48 = vld [vmem:[%s2485_s3 + $0xc0] sm:$0xff]  ;;  %v2038_v50 = vld [vmem:[%s2485_s3 + $0x2b8] sm:$0xff] }
  0x2b   : > { %768 = vmatpush.bf16.msra.mxu3 %v2007_v9  ;;  %v2267_v58 = vsel %vm2242_vm2, 0, %v311_v51  ;;  %v476_v61 = vshrl.u32 %v2259_v55, 16  ;;  %v478_v62 = vshll.u32 %v2259_v55, 16  ;;  %v507_v63 = vshll.u32 %v2263_v57, 16  ;;  %v2046_v51 = vld [vmem:[%s2485_s3 + $0x2f8] sm:$0xff] }
  0x2c   : > { %967 = vmatpush.bf16.msrb.mxu0 %v1958_v13  ;;  %v2290_v3 = vsel %vm2242_vm2, 0, %v318_v56  ;;  %v488_v4 = vshrl.u32 %v2267_v58, 16  ;;  %v490_v5 = vshll.u32 %v2267_v58, 16  ;;  %v485_v7 = vrot.slane %v483_v52, 1  ;;  %v2021_v52 = vld [vmem:[%s2485_s3 + $0x230] sm:$0xff] }
  0x2d   : > { %981 = vmatpush.bf16.msrb.mxu1 %v1966_v14  ;;  %v480_v6 = vrot.slane %v478_v62, 1  ;;  %v500_v8 = vshrl.u32 %v2290_v3, 16  ;;  %v502_v9 = vshll.u32 %v2290_v3, 16  ;;  %v325_v12 = vor.u32 %v323_v54, %v322_v53  ;;  %v2037_v54 = vld [vmem:[%s2485_s3 + $0x2b0] sm:$0xff]  ;;  %v2044_v62 = vld [vmem:[%s2485_s3 + $0x2e8] sm:$0xff] }
  0x2e   : > { %995 = vmatpush.bf16.msrb.mxu2 %v1974_v17  ;;  %v492_v10 = vrot.slane %v490_v5, 1  ;;  %v509_v15 = vrot.slane %v507_v63, 1  ;;  %v1962_v17 = vld [vmem:[%s2485_s3 + $0x58] sm:$0xff]  ;;  %v497_v21 = vrot.slane %v495_v11, 1  ;;  %v2045_v56 = vld [vmem:[%s2485_s3 + $0x2f0] sm:$0xff]  ;;  %v2019_v63 = vld [vmem:[%s2485_s3 + $0x220] sm:$0xff] }
  0x2f   : > { %1009 = vmatpush.bf16.msrb.mxu3 %v1982_v18  ;;  %v481_v13 = vor.u32 %v480_v6, %v476_v61  ;;  %v504_v14 = vrot.slane %v502_v9, 1  ;;  %v2305_v18 = vsel %vm2242_vm2, %v322_v53, 0  ;;  %v2312_v22 = vsel %vm2242_vm2, 0, %v325_v12  ;;  %v2029_v53 = vld [vmem:[%s2485_s3 + $0x270] sm:$0xff]  ;;  %v2036_v61 = vld [vmem:[%s2485_s3 + $0x2a8] sm:$0xff]  ;;  %v2018_v5 = vld [vmem:[%s2485_s3 + $0x218] sm:$0xff] }
  0x30   : > { %968 = vmatpush.bf16.msrb.mxu0 %v1957_v28  ;;  %v493_v20 = vor.u32 %v492_v10, %v488_v4  ;;  %v519_v23 = vshll.u32 %v2305_v18, 16  ;;  %v512_v27 = vshrl.u32 %v2312_v22, 16  ;;  %v514_v28 = vshll.u32 %v2312_v22, 16  ;;  %v2043_v4 = vld [vmem:[%s2485_s3 + $0x2e0] sm:$0xff]  ;;  %v2026_v6 = vld [vmem:[%s2485_s3 + $0x258] sm:$0xff]  ;;  %v2017_v9 = vld [vmem:[%s2485_s3 + $0x210] sm:$0xff] }
  0x31   : > { %982 = vmatpush.bf16.msrb.mxu1 %v1965_v29  ;;  %v486_v24 = vsel %vm474_vm3, %v481_v13, %v485_v7  ;;  %v505_v25 = vor.u32 %v504_v14, %v500_v8  ;;  %v2034_v7 = vld [vmem:[%s2485_s3 + $0x298] sm:$0xff]  ;;  %v2025_v10 = vld [vmem:[%s2485_s3 + $0x250] sm:$0xff]  ;;  %v2016_v13 = vld [vmem:[%s2485_s3 + $0x208] sm:$0xff] }
  0x32   : > { %996 = vmatpush.bf16.msrb.mxu2 %v1973_v30  ;;  %727 = vmatmul.bf16.vlgmr.msra.gmra.mxu0 %v486_v24  ;;  %v498_v29 = vsel %vm474_vm3, %v493_v20, %v497_v21  ;;  %v521_v32 = vrot.slane %v519_v23, 1  ;;  %v2042_v8 = vld [vmem:[%s2485_s3 + $0x2d8] sm:$0xff]  ;;  %v2033_v11 = vld [vmem:[%s2485_s3 + $0x290] sm:$0xff]  ;;  %v2024_v14 = vld [vmem:[%s2485_s3 + $0x248] sm:$0xff]  ;;  %v1097_v20 = vrot.slane %v2259_v55, 1  ;;  %v1104_v21 = vrot.slane %v2263_v57, 1 }
  0x33   : > { %1010 = vmatpush.bf16.msrb.mxu3 %v1981_v31  ;;  %v510_v30 = vsel %vm474_vm3, %v505_v25, %v509_v15  ;;  %v516_v31 = vrot.slane %v514_v28, 1  ;;  %741 = vmatmul.bf16.vlgmr.msra.gmra.mxu1 %v498_v29  ;;  %v2041_v12 = vld [vmem:[%s2485_s3 + $0x2d0] sm:$0xff]  ;;  %v2032_v15 = vld [vmem:[%s2485_s3 + $0x288] sm:$0xff]  ;;  %v1101_v23 = vrot.slane %v2280_v0, 1  ;;  %v2023_v24 = vld [vmem:[%s2485_s3 + $0x240] sm:$0xff]  ;;  %v1100_v25 = vrot.slane %v2267_v58, 1 }
  0x34   : > { %969 = vmatpush.bf16.msrb.mxu0 %v1956_v42  ;;  %755 = vmatmul.bf16.vlgmr.msra.gmra.mxu2 %v510_v30  ;;  %v1976_v42 = vld [vmem:[%s2485_s3 + $0xc8] sm:$0xff]  ;;  %v2039_v57 = vld [vmem:[%s2485_s3 + $0x2c0] sm:$0xff]  ;;  %v1106_v0 = vrot.slane %v2312_v22, 1 }
  0x35   : > { %983 = vmatpush.bf16.msrb.mxu1 %v1964_v43  ;;  %v517_v35 = vor.u32 %v516_v31, %v512_v27  ;;  %v1951_v43 = vld [vmem:[%s2485_s3] sm:$0xff]  ;;  %v1102_v28 = vsel %vm1096_vm4, %v1100_v25, %v1101_v23 }
  0x36   : > { %997 = vmatpush.bf16.msrb.mxu2 %v1972_v46  ;;  %v2030_v46 = vld [vmem:[%s2485_s3 + $0x278] sm:$0xff] }
  0x37   : > { %1011 = vmatpush.bf16.msrb.mxu3 %v1980_v47  ;;  %v522_v38 = vsel %vm474_vm3, %v517_v35, %v521_v32  ;;  %v1967_v47 = vld [vmem:[%s2485_s3 + $0x80] sm:$0xff] }
  0x38   : > { %970 = vmatpush.bf16.msrb.mxu0 %v1955_v59  ;;  %769 = vmatmul.bf16.vlgmr.msra.gmra.mxu3 %v522_v38  ;;  %v2020_v59 = vld [vmem:[%s2485_s3 + $0x228] sm:$0xff] }
  0x39   : > { %984 = vmatpush.bf16.msrb.mxu1 %v1963_v60  ;;  %v2028_v60 = vld [vmem:[%s2485_s3 + $0x268] sm:$0xff] }
  0x3a   : > { %998 = vmatpush.bf16.msrb.mxu2 %v1971_v1  ;;  %v2027_v1 = vld [vmem:[%s2485_s3 + $0x260] sm:$0xff] }
  0x3b   : > { %1012 = vmatpush.bf16.msrb.mxu3 %v1979_v2  ;;  %v2035_v2 = vld [vmem:[%s2485_s3 + $0x2a0] sm:$0xff] }
  0x3c   : > { %971 = vmatpush.bf16.msrb.mxu0 %v1954_v16  ;;  %v2040_v16 = vld [vmem:[%s2485_s3 + $0x2c8] sm:$0xff] }
  0x3d   : > { %985 = vmatpush.bf16.msrb.mxu1 %v1962_v17  ;;  %v1098_v17 = vrot.slane %v2254_v49, 1  ;;  %v2031_v49 = vld [vmem:[%s2485_s3 + $0x280] sm:$0xff] }
  0x3e   : > { %999 = vmatpush.bf16.msrb.mxu2 %v1970_v26  ;;  %v1103_v26 = vrot.slane %v2290_v3, 1 }
  0x3f   : > { %1013 = vmatpush.bf16.msrb.mxu3 %v1978_v19  ;;  %v2015_v19 = vld [vmem:[%s2485_s3 + $0x200] sm:$0xff]  ;;  %v1099_v27 = vsel %vm1096_vm4, %v1097_v20, %v1098_v17 }
  0x40   : > { %972 = vmatpush.bf16.msrb.mxu0 %v1953_v33 }
  0x41   : > { %986 = vmatpush.bf16.msrb.mxu1 %v1961_v34 }
  0x42   : > { %1000 = vmatpush.bf16.msrb.mxu2 %v1969_v36 }
  0x43   : > { %1014 = vmatpush.bf16.msrb.mxu3 %v1977_v37 }
  0x44   : > { %973 = vmatpush.bf16.msrb.mxu0 %v1952_v39 }
  0x45   : > { %987 = vmatpush.bf16.msrb.mxu1 %v1960_v40 }
  0x46   : > { %1001 = vmatpush.bf16.msrb.mxu2 %v1968_v41 }
  0x47   : > { %1015 = vmatpush.bf16.msrb.mxu3 %v1976_v42 }
  0x48   : > { %974 = vmatpush.bf16.msrb.mxu0 %v1951_v43 }
  0x49   : > { %988 = vmatpush.bf16.msrb.mxu1 %v1959_v44 }
  0x4a   : > { %1002 = vmatpush.bf16.msrb.mxu2 %v1967_v47 }
  0x4b   : > { %1016 = vmatpush.bf16.msrb.mxu3 %v1975_v48  ;;  %975 = vmatmul.bf16.vlgmr.msrb.gmra.mxu0 %v2259_v55  ;;  %v1107_v55 = vrot.slane %v2305_v18, 1 }
  0x4c   : > { %1305 = vmatpush.bf16.msra.mxu0 %v2022_v45  ;;  %989 = vmatmul.bf16.vlgmr.msrb.gmra.mxu1 %v2267_v58  ;;  %v1105_v58 = vsel %vm1096_vm4, %v1103_v26, %v1104_v21 }
  0x4d   : > { %1319 = vmatpush.bf16.msra.mxu1 %v2030_v46  ;;  %1003 = vmatmul.bf16.vlgmr.msrb.gmra.mxu2 %v2290_v3  ;;  %v1108_v3 = vsel %vm1096_vm4, %v1106_v0, %v1107_v55 }
  0x4e   : > { %1333 = vmatpush.bf16.msra.mxu2 %v2038_v50  ;;  %1017 = vmatmul.bf16.vlgmr.msrb.gmra.mxu3 %v2312_v22 }
  0x4f   : > { %1347 = vmatpush.bf16.msra.mxu3 %v2046_v51 }
  0x50   : > { %1306 = vmatpush.bf16.msra.mxu0 %v2021_v52 }
  0x51   : > { %1320 = vmatpush.bf16.msra.mxu1 %v2029_v53 }
  0x52   : > { %1334 = vmatpush.bf16.msra.mxu2 %v2037_v54 }
  0x53   : > { %1348 = vmatpush.bf16.msra.mxu3 %v2045_v56 }
  0x54   : > { %1307 = vmatpush.bf16.msra.mxu0 %v2020_v59 }
  0x55   : > { %1321 = vmatpush.bf16.msra.mxu1 %v2028_v60 }
  0x56   : > { %1335 = vmatpush.bf16.msra.mxu2 %v2036_v61 }
  0x57   : > { %1349 = vmatpush.bf16.msra.mxu3 %v2044_v62 }
  0x58   : > { %1308 = vmatpush.bf16.msra.mxu0 %v2019_v63 }
  0x59   : > { %1322 = vmatpush.bf16.msra.mxu1 %v2027_v1 }
  0x5a   : > { %1336 = vmatpush.bf16.msra.mxu2 %v2035_v2  ;;  %v2055_v2 = vld [vmem:[%s2486_s4] ss:$0 sm:$0xff] }
  0x5b   : > { %1350 = vmatpush.bf16.msra.mxu3 %v2043_v4 }
  0x5c   : > { %1309 = vmatpush.bf16.msra.mxu0 %v2018_v5 }
  0x5d   : > { %1323 = vmatpush.bf16.msra.mxu1 %v2026_v6 }
  0x5e   : > { %1337 = vmatpush.bf16.msra.mxu2 %v2034_v7 }
  0x5f   : > { %1351 = vmatpush.bf16.msra.mxu3 %v2042_v8 }
  0x60   : > { %1310 = vmatpush.bf16.msra.mxu0 %v2017_v9 }
  0x61   : > { %1324 = vmatpush.bf16.msra.mxu1 %v2025_v10 }
  0x62   : > { %1338 = vmatpush.bf16.msra.mxu2 %v2033_v11 }
  0x63   : > { %1352 = vmatpush.bf16.msra.mxu3 %v2041_v12 }
  0x64   : > { %1311 = vmatpush.bf16.msra.mxu0 %v2016_v13 }
  0x65   : > { %1325 = vmatpush.bf16.msra.mxu1 %v2024_v14 }
  0x66   : > { %1339 = vmatpush.bf16.msra.mxu2 %v2032_v15 }
  0x67   : > { %1353 = vmatpush.bf16.msra.mxu3 %v2040_v16 }
  0x68   : > { %1312 = vmatpush.bf16.msra.mxu0 %v2015_v19 }
  0x69   : > { %1326 = vmatpush.bf16.msra.mxu1 %v2023_v24 }
  0x6a   : > { %1340 = vmatpush.bf16.msra.mxu2 %v2031_v49 }
  0x6b   : > { %1354 = vmatpush.bf16.msra.mxu3 %v2039_v57  ;;  %1313 = vmatmul.bf16.vlgmr.msra.gmra.mxu0 %v1099_v27 }
  0x6c   : > { %1327 = vmatmul.bf16.vlgmr.msra.gmra.mxu1 %v1102_v28 }
  0x6d   : > { %1341 = vmatmul.bf16.vlgmr.msra.gmra.mxu2 %v1105_v58 }
  0x6e   : > { %1355 = vmatmul.bf16.vlgmr.msra.gmra.mxu3 %v1108_v3 }
  0xaf   : > { %v728_v18 = vpop.f32.mrf.mxu0 }
  0xb0   : > { %v742_v29 = vpop.f32.mrf.mxu1 }
  0xb1   : > { %v743_v37 = vadd.f32 %v742_v29, %v728_v18 }
  0xb7   : > { %v756_v30 = vpop.f32.mrf.mxu2  ;;  %v730_v31 = vpop.f32.mrf.mxu0 }
  0xb8   : > { %v744_v32 = vpop.f32.mrf.mxu1  ;;  %v757_v39 = vadd.f32 %v756_v30, %v743_v37 }
  0xb9   : > { %v745_v44 = vadd.f32 %v744_v32, %v730_v31 }
  0xbb   : > { %v770_v22 = vpop.f32.mrf.mxu3 }
  0xbc   : > { %v771_v43 = vadd.f32 %v770_v22, %v757_v39 }
  0xbf   : > { %v758_v33 = vpop.f32.mrf.mxu2 }
  0xc0   : > { %v759_v47 = vadd.f32 %v758_v33, %v745_v44 }
  0xc3   : > { %v772_v34 = vpop.f32.mrf.mxu3 }
  0xc4   : > { %v773_v53 = vadd.f32 %v772_v34, %v759_v47 }
  0xc8   : > { %v976_v35 = vpop.f32.mrf.mxu0 }
  0xc9   : > { %v990_v36 = vpop.f32.mrf.mxu1  ;;  %v977_v45 = vadd.f32 %v976_v35, %v771_v43 }
  0xcb   : > { %v991_v52 = vadd.f32 %v990_v36, %v977_v45 }
  0xd0   : > { %v1004_v38 = vpop.f32.mrf.mxu2  ;;  %v978_v41 = vpop.f32.mrf.mxu0 }
  0xd1   : > { %v1018_v40 = vpop.f32.mrf.mxu3  ;;  %v992_v42 = vpop.f32.mrf.mxu1  ;;  %v1005_v56 = vadd.f32 %v1004_v38, %v991_v52  ;;  %v979_v60 = vadd.f32 %v978_v41, %v773_v53 }
  0xd3   : > { %v1019_v63 = vadd.f32 %v1018_v40, %v1005_v56  ;;  %v993_v6 = vadd.f32 %v992_v42, %v979_v60 }
  0xd8   : > { %v1006_v46 = vpop.f32.mrf.mxu2 }
  0xd9   : > { %v1020_v48 = vpop.f32.mrf.mxu3  ;;  %v1007_v8 = vadd.f32 %v1006_v46, %v993_v6 }
  0xdb   : > { %v1021_v14 = vadd.f32 %v1020_v48, %v1007_v8 }
  0xe8   : > { %v1314_v50 = vpop.f32.mrf.mxu0 }
  0xe9   : > { %v1328_v51 = vpop.f32.mrf.mxu1 }
  0xea   : > { %v1329_v54 = vadd.f32 %v1328_v51, %v1314_v50 }
  0xf0   : > { %v1342_v59 = vpop.f32.mrf.mxu2  ;;  %v1316_v4 = vpop.f32.mrf.mxu0 }
  0xf1   : > { %v1343_v61 = vadd.f32 %v1342_v59, %v1329_v54  ;;  %v1356_v62 = vpop.f32.mrf.mxu3  ;;  %v1330_v5 = vpop.f32.mrf.mxu1 }
  0xf2   : > { %v1331_v10 = vadd.f32 %v1330_v5, %v1316_v4 }
  0xf3   : > { %v1357_v1 = vadd.f32 %v1356_v62, %v1343_v61 }
  0xf5   : > { %v1361_v7 = vadd.f32 %v1357_v1, %v1019_v63 }
  0xf7   : > { %v1367_v9 = vadd.f32 %v2055_v2, %v1361_v7 }
  0xf8   : > { %v1344_v11 = vpop.f32.mrf.mxu2 }
  0xf9   : > { %1369 = vst [vmem:[%s224_s16] sm:$0xff] %v1367_v9  ;;  %v1345_v12 = vadd.f32 %v1344_v11, %v1331_v10  ;;  %v1358_v13 = vpop.f32.mrf.mxu3 }
  0xfb   : > { %v1359_v15 = vadd.f32 %v1358_v13, %v1345_v12 }
  0xfd   : > { %v1362_v16 = vadd.f32 %v1359_v15, %v1021_v14 }
  0xff   : > { %v1368_v17 = vadd.f32 %v2055_v2, %v1362_v16 }
 0x101   : > { %1370 = vst [vmem:[%s224_s16 + $0x8] sm:$0xff] %v1368_v17 }
 0x102 PF: > { %s15_s18 = sadd.s32 1, %s2062_s18  }
 0x103   : > { %p12_p4 = scmp.ge.s32.totalorder %s15_s18, 4  }
 0x105   :  { %14 = sbr.rel (!%p12_p4) target bundleno = 1 (0x1), region = 72 }

</bundles_post_ra>
